<compile_context>
chip_gen: v6e
topology: v6e:2x2x1
jax: 0.10.0
libtpu: 0.0.40
codegen_flags: <defaults>
</compile_context>

<pallas_src>
import functools

import numpy as np
import jax
import jax.numpy as jnp
from jax.experimental import pallas as pl
from jax.experimental.pallas import tpu as pltpu


def _round_up(x, m):
    return ((x + m - 1) // m) * m


# --------------------- Gell-Mann basis (numqi ordering convention) ---------------------
# symmetric off-diagonal, antisymmetric off-diagonal, diagonal, identity (last).
def gellmann_matrices(d):
    mats = []
    for i in range(d):
        for j in range(i + 1, d):
            m = np.zeros((d, d), dtype=np.complex128)
            m[i, j] = 1.0
            m[j, i] = 1.0
            mats.append(m)
    for i in range(d):
        for j in range(i + 1, d):
            m = np.zeros((d, d), dtype=np.complex128)
            m[i, j] = -1j
            m[j, i] = 1j
            mats.append(m)
    for l in range(1, d):
        m = np.zeros((d, d), dtype=np.complex128)
        m[np.arange(l), np.arange(l)] = 1.0
        m[l, l] = -float(l)
        mats.append(m * np.sqrt(2.0 / (l * (l + 1))))
    mats.append(np.eye(d, dtype=np.complex128) * np.sqrt(2.0 / d))
    return np.stack(mats)  # (d*d, d, d)


def _real_embed(h):
    # complex Hermitian (d, d) -> real symmetric (2d, 2d) with identical eigenvalues.
    return np.block([[h.real, -h.imag], [h.imag, h.real]])


# ---------------------- host-side one-time constant construction ----------------------
def build_bes_constants(dimA, dimB, dm0):
    """Pads everything once with numpy; returns the augmented basis as a device array."""
    d = dimA * dimB
    n = d * d - 1                      # active (non-identity) Gell-Mann coefficients
    m = 4 * d * d                      # flattened (2d, 2d) real embedding
    n_pad = _round_up(n + 1, 128)      # +1 row for the folded dm0_pt
    m_pad = _round_up(m, 128)

    # partial transpose on subsystem B, exactly as in set_density_matrix
    dm0_pt = dm0.reshape(dimA, dimB, dimA, dimB).transpose(0, 3, 2, 1).reshape(d, d)
    gm = gellmann_matrices(d)

    basis_aug = np.zeros((n_pad, m_pad), dtype=np.float32)
    for k in range(n):                                      # identity coeff is the
        basis_aug[k, :m] = _real_embed(gm[k]).reshape(-1)   # appended 0 -> omitted;
    basis_aug[n, :m] = _real_embed(dm0_pt).reshape(-1)      # row n = dm0_pt (coeff 1.0)
    return jnp.asarray(basis_aug), dm0_pt, d, n, m


# ----------------------------------- Pallas kernel -------------------------------------
def bes_volume_kernel(theta_ref, basis_ref, out_ref, *, norm, dm0_row):
    theta = theta_ref[...]                                      # (TB, N_PAD), zero padded
    sumsq = jnp.sum(theta * theta, axis=1, keepdims=True)       # per-row ||theta||^2
    scale = norm * jax.lax.rsqrt(jnp.maximum(sumsq, 1e-30))     # EUP rsqrt + 0-theta guard
    col = jax.lax.broadcasted_iota(jnp.int32, theta.shape, 1)
    onehot = (col == dm0_row).astype(jnp.float32)               # coeff 1.0 for folded dm0
    coeff = theta * scale + onehot                              # theta[:, dm0_row] == 0
    # (TB, N_PAD) @ (N_PAD, M_PAD) MXU matmul: H = dm0_pt + sum_k c_k G_k (real embedding)
    out_ref[...] = jnp.dot(coeff, basis_ref[...], preferred_element_type=jnp.float32)


@functools.partial(jax.jit, static_argnames=("d", "n", "norm", "tb"))
def bes_volume_forward(theta_batch, basis_aug, *, d, n, norm, tb=128):
    """theta_batch: (B, n) float32/64. Returns (B,) lambda_min of dm0_pt + sum c_k G_k."""
    B = theta_batch.shape[0]
    n_pad, m_pad = basis_aug.shape
    m = 4 * d * d
    b_pad = _round_up(max(B, 1), tb)   # batch need not be a multiple of the tile

    theta_p = jnp.zeros((b_pad, n_pad), jnp.float32).at[:B, :n].set(
        theta_batch.astype(jnp.float32))

    out = pl.pallas_call(
        functools.partial(bes_volume_kernel, norm=float(norm), dm0_row=n),
        out_shape=jax.ShapeDtypeStruct((b_pad, m_pad), jnp.float32),
        grid=(b_pad // tb,),
        in_specs=[
            pl.BlockSpec((tb, n_pad), lambda i: (i, 0)),      # per-step theta tile
            pl.BlockSpec((n_pad, m_pad), lambda i: (0, 0)),   # basis resident in VMEM
        ],
        out_specs=pl.BlockSpec((tb, m_pad), lambda i: (i, 0)),
        compiler_params=pltpu.CompilerParams(dimension_semantics=("parallel",)),
    )(theta_p, basis_aug)

    # TODO(synk): torch.linalg.eigvalsh has no Pallas primitive; a single BATCHED XLA
    # eigh over all B kernel-built real-symmetric embeddings replaces per-theta eigh calls.
    W = out[:B, :m].reshape(B, 2 * d, 2 * d)
    return jnp.linalg.eigvalsh(W)[:, 0]


if __name__ == "__main__":
    dimA, dimB = 2, 3
    d = dimA * dimB
    norm = 1e-4
    B = 256                                   # batch of independent theta candidates

    key = jax.random.PRNGKey(0)
    k1, k2, k3 = jax.random.split(key, 3)

    # density matrix (set_density_matrix input): Hermitian, PSD, unit trace
    ar = np.asarray(jax.random.normal(k1, (d, d)), dtype=np.float64)
    ai = np.asarray(jax.random.normal(k2, (d, d)), dtype=np.float64)
    A = ar + 1j * ai
    dm0 = A @ A.conj().T
    dm0 = dm0 / np.trace(dm0).real

    basis_aug, dm0_pt, d, n, m = build_bes_constants(dimA, dimB, dm0)

    # B candidate parameter vectors (row 0 plays the role of the module's self.theta)
    theta_batch = jax.random.uniform(k3, (B, n), minval=-1.0, maxval=1.0)

    lam = bes_volume_forward(theta_batch, basis_aug, d=d, n=n, norm=norm)
    lam = jax.block_until_ready(lam)

    # float64 numpy reference of the exact torch semantics, checked on several rows
    gm = gellmann_matrices(d)
    theta_np = np.asarray(theta_batch, dtype=np.float64)
    max_err = 0.0
    for row in (0, 1, B // 2, B - 1):
        tmp0 = theta_np[row] * (norm / np.linalg.norm(theta_np[row]))
        tmp1 = np.concatenate([tmp0, np.zeros(1)])
        mat = dm0_pt + np.einsum("k,kij->ij", tmp1, gm)
        ref = np.linalg.eigvalsh(mat)[0]
        max_err = max(max_err, abs(float(lam[row]) - float(ref)))
    assert max_err < 1e-5, max_err    # smaller than the norm=1e-4 theta effect
    print("KERNEL_OK")
</pallas_src>

<mosaic_0001>
module attributes {stable_mosaic.version = 11 : i64} {
  func.func @bes_volume_kernel(%arg0: i32, %arg1: memref<128x128xf32, #tpu.memory_space<vmem>>, %arg2: memref<128x256xf32, #tpu.memory_space<vmem>>, %arg3: memref<128x256xf32, #tpu.memory_space<vmem>>) attributes {dimension_semantics = [#tpu.dimension_semantics<parallel>], iteration_bounds = array<i64: 2>, scalar_prefetch = 0 : i64, scratch_operands = 0 : i64, tpu.core_type = #tpu.core_type<tc>, window_params = [{transform_indices = @transform_0, window_bounds = array<i64: 128, 128>}, {pipeline_mode = #tpu.pipeline_mode<synchronous>, transform_indices = @transform_1, window_bounds = array<i64: 128, 256>}, {transform_indices = @transform_2, window_bounds = array<i64: 128, 256>}]} {
    %c0 = arith.constant 0 : index
    %c0_0 = arith.constant 0 : index
    %0 = vector.load %arg1[%c0, %c0_0] : memref<128x128xf32, #tpu.memory_space<vmem>>, vector<128x128xf32>
    %1 = arith.mulf %0, %0 : vector<128x128xf32>
    %cst = arith.constant dense<0.000000e+00> : vector<128xf32>
    %2 = vector.multi_reduction <add>, %1, %cst [1] : vector<128x128xf32> to vector<128xf32>
    %3 = vector.shape_cast %2 : vector<128xf32> to vector<128x1xf32>
    %cst_1 = arith.constant 1.000000e-30 : f32
    %4 = vector.broadcast %cst_1 : f32 to vector<128x1xf32>
    %5 = arith.maximumf %3, %4 : vector<128x1xf32>
    %6 = math.rsqrt %5 : vector<128x1xf32>
    %cst_2 = arith.constant 9.99999974E-5 : f32
    %7 = vector.broadcast %cst_2 : f32 to vector<128x1xf32>
    %8 = arith.mulf %7, %6 : vector<128x1xf32>
    %9 = tpu.iota {dimensions = array<i32: 1>} : vector<128x128xi32>
    %c35_i32 = arith.constant 35 : i32
    %10 = vector.broadcast %c35_i32 : i32 to vector<128x128xi32>
    %11 = arith.cmpi eq, %9, %10 : vector<128x128xi32>
    %12 = arith.extui %11 : vector<128x128xi1> to vector<128x128xi32>
    %13 = arith.sitofp %12 : vector<128x128xi32> to vector<128x128xf32>
    %14 = vector.broadcast %8 : vector<128x1xf32> to vector<128x128xf32>
    %15 = arith.mulf %0, %14 : vector<128x128xf32>
    %16 = arith.addf %15, %13 : vector<128x128xf32>
    %c0_3 = arith.constant 0 : index
    %c0_4 = arith.constant 0 : index
    %17 = vector.load %arg2[%c0_3, %c0_4] : memref<128x256xf32, #tpu.memory_space<vmem>>, vector<128x256xf32>
    %cst_5 = arith.constant dense<0.000000e+00> : vector<128x256xf32>
    %18 = tpu.matmul %16, %17, %cst_5 {dimension_numbers = #tpu.dot_dimension_numbers<[1], [0], [0], [1], [0, 0, 1, 1], [], []>} : vector<128x128xf32>, vector<128x256xf32>, vector<128x256xf32> -> vector<128x256xf32>
    %c0_6 = arith.constant 0 : index
    %c0_7 = arith.constant 0 : index
    %19 = vector.load %arg3[%c0_6, %c0_7] : memref<128x256xf32, #tpu.memory_space<vmem>>, vector<128x256xf32>
    tpu.vector_store %arg3[%c0_6, %c0_7], %18 {strides = array<i32>} : memref<128x256xf32, #tpu.memory_space<vmem>>, vector<128x256xf32>,
    return
  }
  func.func @transform_0(%arg0: i32) -> (i32, i32) {
    %c0_i32 = arith.constant 0 : i32
    %c0_i32_0 = arith.constant 0 : i32
    return %arg0, %c0_i32 : i32, i32
  }
  func.func @transform_1(%arg0: i32) -> (i32, i32) {
    %c0_i32 = arith.constant 0 : i32
    %c0_i32_0 = arith.constant 0 : i32
    %c0_i32_1 = arith.constant 0 : i32
    return %c0_i32, %c0_i32_0 : i32, i32
  }
  func.func @transform_2(%arg0: i32) -> (i32, i32) {
    %c0_i32 = arith.constant 0 : i32
    %c0_i32_0 = arith.constant 0 : i32
    return %arg0, %c0_i32 : i32, i32
  }
}

</mosaic_0001>

<bundles_post_ra>
// kernel: bes_volume_forward.1
= control target key start
LH: loop header
LB: loop body
LE: loop exit
PB: predicated region body
PF: predicated region fallthrough
CT: control target
= control target key end

     0   :  { %7 = vsyncpa [#allocation3], 0  ;;  %s767_s9 = smov 0   ;;  %s976_s0 = inlined_call_operand.vmem [shape: f32[256,128], index: 0, kind: input, shape index: {}]   ;;  %s977_s1 = inlined_call_operand.hbm [shape: f32[128,256], index: 1, kind: input, shape index: {}]   ;;  %s978_s2 = inlined_call_operand.vmem [shape: f32[256,256], index: 2, kind: output, shape index: {}]  }
   0x1 LB: > { %s608_s10 = sadd.s32 4294967295, %s746_s9   ;;  %p610_p0 = scmp.ge.s32.totalorder %s746_s9, 1  ;;  %s746_s9 = sphi %s767_s9, %s13_s9  }
   0x2   : > { %p91_p1 = scmp.lt.s32.totalorder %s746_s9, 3  ;;  %s748_s11 = smov [#allocation2]  }
   0x3   : > { %s103_s12 = sshll.u32 %s748_s11, 4  ;;  %p779_p3 = scmp.eq.s32.totalorder %s608_s10, 0  ;;  %s104_s12 = int_to_ptr.vmem [resolvable:$true] %s103_s12 }
   0x4   : > { %p775_p2 = pnand %p610_p0, %p91_p1  ;;  %s721_s15 = scalar_lea.vmem %s104_s12, 4096 }
   0x5   : > { %p722_p7 = scmp.ne.s32.totalorder %s104_s12, %s721_s15  ;;  %p729_p10 = scmp.lt.s32.totalorder %s104_s12, %s104_s12 }
   0x6   : > { %p660_p4 = pneg %p775_p2  ;;  %p730_p11 = scmp.lt.s32.totalorder %s721_s15, %s721_s15 }
   0x8   : > { %p661_p5 = pnand %p779_p3, %p660_p4  ;;  %p731_p12 = por %p730_p11, %p729_p10 }
   0xa   : > { %p712_p6 = pneg %p661_p5 }
   0xc   : > { %p724_p8 = pnand %p722_p7, %p712_p6 }
   0xe   : > { %p725_p9 = pneg %p724_p8 }
  0x10   : > { %p732_p13 = pnand %p731_p12, %p725_p9 }
  0x12   : > { %735 = shalt.err (!%p732_p13)
}
  0x13   : > { %s749_s16 = smov 256   ;;  %s750_s17 = smov 16  }
  0x14   : > { %663 = dma.hbm_to_vmem [thread:$0]  (!%p661_p5), %s977_s1, 4096, %s104_s12, [#allocation3], %s749_s16, %s749_s16, %s750_s17  }
  0x15   : > { %128 = sbr.rel (%p775_p2) target bundleno = 424 (0x1a8), region = 28 }
  0x1a   : > { %741 = dma.done.wait (%p779_p3), [#allocation3], 4096  }
  0x1b   : > { %743 = vsyncadd (%p779_p3), [#allocation3], 4294963200  ;;  %s615_s20 = sshll.u32 %s608_s10, 4  ;;  %v344_v10 = vld [vmem:[#allocation2 + $0xf8] sm:$0xff]  ;;  %v343_v11 = vld [vmem:[#allocation2 + $0xf0] sm:$0xff] }
  0x1c   : > { %p152_p0 = scmp.lt.s32.totalorder %s615_s20, 31  ;;  %345 = vmatprep.subr.mxu0 %v344_v10  ;;  %v342_v12 = vld [vmem:[#allocation2 + $0xe8] sm:$0xff]  ;;  %624 = vmatprep.subr.mxu1 %v344_v10  ;;  %v341_v15 = vld [vmem:[#allocation2 + $0xe0] sm:$0xff]  ;;  %v340_v18 = vld [vmem:[#allocation2 + $0xd8] sm:$0xff] }
  0x1d   : > { %346 = vmatpush1.msra.mxu0 %v343_v11  ;;  %640 = vmatpush1.msra.mxu1 %v343_v11  ;;  %v339_v19 = vld [vmem:[#allocation2 + $0xd0] sm:$0xff]  ;;  %v338_v22 = vld [vmem:[#allocation2 + $0xc8] sm:$0xff]  ;;  %v337_v25 = vld [vmem:[#allocation2 + $0xc0] sm:$0xff] }
  0x1e   : > { %s982_s20 = smov (!%p152_p0, %s615_s20), 31  ;;  %347 = vmatprep.subr.mxu0 %v342_v12  ;;  %625 = vmatprep.subr.mxu1 %v342_v12  ;;  %v336_v26 = vld [vmem:[#allocation2 + $0xb8] sm:$0xff]  ;;  %v335_v29 = vld [vmem:[#allocation2 + $0xb0] sm:$0xff]  ;;  %v334_v32 = vld [vmem:[#allocation2 + $0xa8] sm:$0xff] }
  0x1f   : > { %s616_s21 = sshll.u32 %s982_s20, 3  ;;  %348 = vmatpush1.msra.mxu0 %v341_v15  ;;  %641 = vmatpush1.msra.mxu1 %v341_v15  ;;  %v333_v33 = vld [vmem:[#allocation2 + $0xa0] sm:$0xff]  ;;  %v332_v36 = vld [vmem:[#allocation2 + $0x98] sm:$0xff]  ;;  %v331_v39 = vld [vmem:[#allocation2 + $0x90] sm:$0xff]  ;;  %v276_v15 = vlaneseq  ;;  %s623_s25 = sshll.u32 %s982_s20, 4 }
  0x20   : > { %s802_s24 = scalar_lea.vmem %s976_s0, %s616_s21  ;;  %349 = vmatprep.subr.mxu0 %v340_v18  ;;  %626 = vmatprep.subr.mxu1 %v340_v18  ;;  %v330_v40 = vld [vmem:[#allocation2 + $0x88] sm:$0xff]  ;;  %v329_v43 = vld [vmem:[#allocation2 + $0x80] sm:$0xff]  ;;  %v328_v46 = vld [vmem:[#allocation2 + $0x78] sm:$0xff]  ;;  %s939_s28 = scalar_lea.vmem %s978_s2, %s623_s25 }
  0x21   : > { %v805_v0 = vld [vmem:[%s802_s24] sm:$0xff]  ;;  %v808_v1 = vld [vmem:[%s802_s24 + $0x8] sm:$0xff]  ;;  %v825_v8 = vld [vmem:[%s802_s24 + $0x10] sm:$0xff]  ;;  %350 = vmatpush1.msra.mxu0 %v339_v19  ;;  %642 = vmatpush1.msra.mxu1 %v339_v19 }
  0x22   : > { %v811_v2 = vld [vmem:[%s802_s24 + $0x40] sm:$0xff]  ;;  %v180_v3 = vmul.f32 %v805_v0, %v805_v0  ;;  %v181_v4 = vmul.f32 %v808_v1, %v808_v1  ;;  %v818_v5 = vld [vmem:[%s802_s24 + $0x48] sm:$0xff]  ;;  %v828_v9 = vld [vmem:[%s802_s24 + $0x50] sm:$0xff]  ;;  %v182_v13 = vmul.f32 %v825_v8, %v825_v8  ;;  %351 = vmatprep.subr.mxu0 %v338_v22  ;;  %627 = vmatprep.subr.mxu1 %v338_v22  ;;  %v277_v22 = vand.u32 127, %v276_v15 }
  0x23   : > { %v188_v6 = vmul.f32 %v811_v2, %v811_v2  ;;  %v189_v7 = vmul.f32 %v818_v5, %v818_v5  ;;  %v190_v14 = vmul.f32 %v828_v9, %v828_v9  ;;  %v835_v16 = vld [vmem:[%s802_s24 + $0x18] sm:$0xff]  ;;  %v845_v23 = vld [vmem:[%s802_s24 + $0x20] sm:$0xff]  ;;  %v855_v30 = vld [vmem:[%s802_s24 + $0x28] sm:$0xff]  ;;  %352 = vmatpush1.msra.mxu0 %v337_v25  ;;  %643 = vmatpush1.msra.mxu1 %v337_v25 }
  0x24   : > { %196 = vadd.xlane.f32.xlu0 %v180_v3  ;;  %198 = vadd.xlane.f32.xlu1 %v181_v4  ;;  %v838_v17 = vld [vmem:[%s802_s24 + $0x58] sm:$0xff]  ;;  %v183_v20 = vmul.f32 %v835_v16, %v835_v16  ;;  %v848_v24 = vld [vmem:[%s802_s24 + $0x60] sm:$0xff]  ;;  %v184_v27 = vmul.f32 %v845_v23, %v845_v23  ;;  %v858_v31 = vld [vmem:[%s802_s24 + $0x68] sm:$0xff]  ;;  %v185_v34 = vmul.f32 %v855_v30, %v855_v30  ;;  %v751_v3 = vmov 0.0  }
  0x25   : > { %v191_v21 = vmul.f32 %v838_v17, %v838_v17  ;;  %v192_v28 = vmul.f32 %v848_v24, %v848_v24  ;;  %353 = vmatprep.subr.mxu0 %v336_v26  ;;  %628 = vmatprep.subr.mxu1 %v336_v26  ;;  %v193_v35 = vmul.f32 %v858_v31, %v858_v31  ;;  %v865_v37 = vld [vmem:[%s802_s24 + $0x30] sm:$0xff]  ;;  %v875_v44 = vld [vmem:[%s802_s24 + $0x38] sm:$0xff]  ;;  %v326_v50 = vld [vmem:[#allocation2 + $0x68] sm:$0xff]  ;;  %vm278_vm0 = vcmp.eq.s32.totalorder %v277_v22, 35 }
  0x26   : > { %354 = vmatpush1.msra.mxu0 %v335_v29  ;;  %644 = vmatpush1.msra.mxu1 %v335_v29  ;;  %v868_v38 = vld [vmem:[%s802_s24 + $0x70] sm:$0xff]  ;;  %v186_v41 = vmul.f32 %v865_v37, %v865_v37  ;;  %v878_v45 = vld [vmem:[%s802_s24 + $0x78] sm:$0xff]  ;;  %v187_v48 = vmul.f32 %v875_v44, %v875_v44  ;;  %v325_v51 = vld [vmem:[#allocation2 + $0x60] sm:$0xff] }
  0x27   : > { %355 = vmatprep.subr.mxu0 %v334_v32  ;;  %629 = vmatprep.subr.mxu1 %v334_v32  ;;  %v194_v42 = vmul.f32 %v868_v38, %v868_v38  ;;  %v327_v47 = vld [vmem:[#allocation2 + $0x70] sm:$0xff]  ;;  %v195_v49 = vmul.f32 %v878_v45, %v878_v45  ;;  %v324_v52 = vld [vmem:[#allocation2 + $0x58] sm:$0xff]  ;;  %v322_v54 = vld [vmem:[#allocation2 + $0x48] sm:$0xff] }
  0x28   : > { %212 = vadd.xlane.f32.xlu0 %v188_v6  ;;  %214 = vadd.xlane.f32.xlu1 %v189_v7  ;;  %v323_v53 = vld [vmem:[#allocation2 + $0x50] sm:$0xff]  ;;  %v321_v55 = vld [vmem:[#allocation2 + $0x40] sm:$0xff]  ;;  %v320_v56 = vld [vmem:[#allocation2 + $0x38] sm:$0xff] }
  0x29   : > { %356 = vmatpush1.msra.mxu0 %v333_v33  ;;  %645 = vmatpush1.msra.mxu1 %v333_v33  ;;  %v319_v57 = vld [vmem:[#allocation2 + $0x30] sm:$0xff]  ;;  %v318_v58 = vld [vmem:[#allocation2 + $0x28] sm:$0xff]  ;;  %v317_v59 = vld [vmem:[#allocation2 + $0x20] sm:$0xff] }
  0x2a   : > { %357 = vmatprep.subr.mxu0 %v332_v36  ;;  %630 = vmatprep.subr.mxu1 %v332_v36  ;;  %v316_v60 = vld [vmem:[#allocation2 + $0x18] sm:$0xff]  ;;  %v315_v61 = vld [vmem:[#allocation2 + $0x10] sm:$0xff]  ;;  %v314_v62 = vld [vmem:[#allocation2 + $0x8] sm:$0xff] }
  0x2b   : > { %358 = vmatpush1.msra.mxu0 %v331_v39  ;;  %646 = vmatpush1.msra.mxu1 %v331_v39  ;;  %v313_v63 = vld [vmem:[#allocation2] sm:$0xff] }
  0x2c   : > { %200 = vadd.xlane.f32.xlu0 %v182_v13  ;;  %216 = vadd.xlane.f32.xlu1 %v190_v14 }
  0x2d   : > { %359 = vmatprep.subr.mxu0 %v330_v40  ;;  %631 = vmatprep.subr.mxu1 %v330_v40 }
  0x2e   : > { %360 = vmatpush1.msra.mxu0 %v329_v43  ;;  %647 = vmatpush1.msra.mxu1 %v329_v43 }
  0x2f   : > { %361 = vmatprep.subr.mxu0 %v328_v46  ;;  %632 = vmatprep.subr.mxu1 %v328_v46 }
  0x30   : > { %202 = vadd.xlane.f32.xlu0 %v183_v20  ;;  %218 = vadd.xlane.f32.xlu1 %v191_v21 }
  0x31   : > { %362 = vmatpush1.msra.mxu0 %v327_v47  ;;  %648 = vmatpush1.msra.mxu1 %v327_v47 }
  0x32   : > { %363 = vmatprep.subr.mxu0 %v326_v50  ;;  %633 = vmatprep.subr.mxu1 %v326_v50 }
  0x33   : > { %364 = vmatpush1.msra.mxu0 %v325_v51  ;;  %649 = vmatpush1.msra.mxu1 %v325_v51 }
  0x34   : > { %204 = vadd.xlane.f32.xlu0 %v184_v27  ;;  %220 = vadd.xlane.f32.xlu1 %v192_v28 }
  0x35   : > { %365 = vmatprep.subr.mxu0 %v324_v52  ;;  %634 = vmatprep.subr.mxu1 %v324_v52 }
  0x36   : > { %366 = vmatpush1.msra.mxu0 %v323_v53  ;;  %650 = vmatpush1.msra.mxu1 %v323_v53 }
  0x37   : > { %367 = vmatprep.subr.mxu0 %v322_v54  ;;  %635 = vmatprep.subr.mxu1 %v322_v54 }
  0x38   : > { %206 = vadd.xlane.f32.xlu0 %v185_v34  ;;  %222 = vadd.xlane.f32.xlu1 %v193_v35 }
  0x39   : > { %368 = vmatpush1.msra.mxu0 %v321_v55  ;;  %651 = vmatpush1.msra.mxu1 %v321_v55 }
  0x3a   : > { %369 = vmatprep.subr.mxu0 %v320_v56  ;;  %636 = vmatprep.subr.mxu1 %v320_v56 }
  0x3b   : > { %370 = vmatpush1.msra.mxu0 %v319_v57  ;;  %652 = vmatpush1.msra.mxu1 %v319_v57 }
  0x3c   : > { %208 = vadd.xlane.f32.xlu0 %v186_v41  ;;  %224 = vadd.xlane.f32.xlu1 %v194_v42  ;;  %v887_v41 = vsel %vm278_vm0, 1.0, %v751_v3 }
  0x3d   : > { %371 = vmatprep.subr.mxu0 %v318_v58  ;;  %637 = vmatprep.subr.mxu1 %v318_v58 }
  0x3e   : > { %372 = vmatpush1.msra.mxu0 %v317_v59  ;;  %653 = vmatpush1.msra.mxu1 %v317_v59 }
  0x3f   : > { %373 = vmatprep.subr.mxu0 %v316_v60  ;;  %409 = vmatprep.mubr.f32.mxu0 %v751_v3 }
  0x40   : > { %210 = vadd.xlane.f32.xlu0 %v187_v48  ;;  %226 = vadd.xlane.f32.xlu1 %v195_v49 }
  0x41   : > { %374 = vmatpush1.msra.mxu0 %v315_v61  ;;  %638 = vmatprep.subr.mxu1 %v316_v60 }
  0x42   : > { %375 = vmatprep.subr.mxu0 %v314_v62  ;;  %654 = vmatpush1.msra.mxu1 %v315_v61 }
  0x43   : > { %376 = vmatpush1.msra.mxu0 %v313_v63  ;;  %639 = vmatprep.subr.mxu1 %v314_v62 }
  0x44   : > { %655 = vmatpush1.msra.mxu1 %v313_v63  ;;  %457 = vmatprep.mubr.f32.mxu1 %v751_v3 }
  0xad   : > { %v197_v4 = vpop.xlane.xlu0 %196  ;;  %v199_v6 = vpop.xlane.xlu1 %198 }
  0xae   : > { %v228_v7 = vmax.f32 %v197_v4, 1e-30  ;;  %v229_v10 = vmax.f32 %v199_v6, 1e-30 }
  0xb0   : > { %678 = vrsqrt.f32 %v228_v7 }
  0xb1   : > { %680 = vrsqrt.f32 %v229_v10  ;;  %v213_v11 = vpop.xlane.xlu0 %212  ;;  %v215_v12 = vpop.xlane.xlu1 %214 }
  0xb2   : > { %v236_v13 = vmax.f32 %v213_v11, 1e-30  ;;  %v237_v14 = vmax.f32 %v215_v12, 1e-30 }
  0xb4   : > { %682 = vrsqrt.f32 %v236_v13 }
  0xb5   : > { %684 = vrsqrt.f32 %v237_v14  ;;  %v201_v18 = vpop.xlane.xlu0 %200  ;;  %v217_v19 = vpop.xlane.xlu1 %216 }
  0xb6   : > { %v230_v20 = vmax.f32 %v201_v18, 1e-30  ;;  %v238_v21 = vmax.f32 %v217_v19, 1e-30 }
  0xb8   : > { %686 = vrsqrt.f32 %v230_v20 }
  0xb9   : > { %688 = vrsqrt.f32 %v238_v21  ;;  %v203_v25 = vpop.xlane.xlu0 %202  ;;  %v219_v26 = vpop.xlane.xlu1 %218 }
  0xba   : > { %v231_v27 = vmax.f32 %v203_v25, 1e-30  ;;  %v239_v28 = vmax.f32 %v219_v26, 1e-30 }
  0xbc   : > { %690 = vrsqrt.f32 %v231_v27 }
  0xbd   : > { %v679_v29 = vpop.eup %678  ;;  %692 = vrsqrt.f32 %v239_v28  ;;  %v205_v32 = vpop.xlane.xlu0 %204 }
  0xbe   : > { %v221_v33 = vpop.xlane.xlu1 %220  ;;  %v681_v34 = vpop.eup %680  ;;  %v260_v35 = vmul.f32 0.0001, %v679_v29  ;;  %v232_v36 = vmax.f32 %v205_v32, 1e-30 }
  0xbf   : > { %v240_v39 = vmax.f32 %v221_v33, 1e-30  ;;  %v261_v40 = vmul.f32 0.0001, %v681_v34 }
  0xc0   : > { %694 = vrsqrt.f32 %v232_v36  ;;  %v281_v42 = vmul.f32 %v260_v35, %v805_v0 }
  0xc1   : > { %v683_v43 = vpop.eup %682  ;;  %696 = vrsqrt.f32 %v240_v39  ;;  %v207_v46 = vpop.xlane.xlu0 %206  ;;  %v282_v48 = vmul.f32 %v261_v40, %v808_v1 }
  0xc2   : > { %v223_v47 = vpop.xlane.xlu1 %222  ;;  %v685_v49 = vpop.eup %684  ;;  %v268_v50 = vmul.f32 0.0001, %v683_v43  ;;  %v233_v51 = vmax.f32 %v207_v46, 1e-30  ;;  %v297_v52 = vadd.f32 %v887_v41, %v281_v42 }
  0xc3   : > { %v241_v53 = vmax.f32 %v223_v47, 1e-30  ;;  %v269_v54 = vmul.f32 0.0001, %v685_v49  ;;  %v298_v55 = vadd.f32 %v887_v41, %v282_v48 }
  0xc4   : > { %698 = vrsqrt.f32 %v233_v51  ;;  %410 = vmatmul.mubr.f32.vlgmr.msra.gmra.mxu0 %v297_v52  ;;  %v289_v56 = vmul.f32 %v268_v50, %v811_v2 }
  0xc5   : > { %v687_v0 = vpop.eup %686  ;;  %700 = vrsqrt.f32 %v241_v53  ;;  %415 = vmatprep.mubr.f32.mxu0 %v751_v3  ;;  %v209_v57 = vpop.xlane.xlu0 %208  ;;  %v290_v1 = vmul.f32 %v269_v54, %v818_v5 }
  0xc6   : > { %v225_v58 = vpop.xlane.xlu1 %224  ;;  %v689_v59 = vpop.eup %688  ;;  %v262_v60 = vmul.f32 0.0001, %v687_v0  ;;  %v234_v61 = vmax.f32 %v209_v57, 1e-30  ;;  %v305_v62 = vadd.f32 %v887_v41, %v289_v56 }
  0xc7   : > { %v242_v63 = vmax.f32 %v225_v58, 1e-30  ;;  %v270_v4 = vmul.f32 0.0001, %v689_v59  ;;  %v306_v2 = vadd.f32 %v887_v41, %v290_v1 }
  0xc8   : > { %702 = vrsqrt.f32 %v234_v61  ;;  %416 = vmatmul.mubr.f32.gmra.mxu0 %v298_v55  ;;  %458 = vmatmul.mubr.f32.vlgmr.msra.gmra.mxu1 %v305_v62  ;;  %v283_v6 = vmul.f32 %v262_v60, %v825_v8 }
  0xc9   : > { %v691_v7 = vpop.eup %690  ;;  %704 = vrsqrt.f32 %v242_v63  ;;  %463 = vmatprep.mubr.f32.mxu1 %v751_v3  ;;  %v211_v10 = vpop.xlane.xlu0 %210  ;;  %421 = vmatprep.mubr.f32.mxu0 %v751_v3  ;;  %v291_v11 = vmul.f32 %v270_v4, %v828_v9 }
  0xca   : > { %v227_v5 = vpop.xlane.xlu1 %226  ;;  %v693_v12 = vpop.eup %692  ;;  %v263_v13 = vmul.f32 0.0001, %v691_v7  ;;  %v235_v14 = vmax.f32 %v211_v10, 1e-30  ;;  %v299_v18 = vadd.f32 %v887_v41, %v283_v6 }
  0xcb   : > { %v243_v15 = vmax.f32 %v227_v5, 1e-30  ;;  %v271_v19 = vmul.f32 0.0001, %v693_v12  ;;  %v307_v8 = vadd.f32 %v887_v41, %v291_v11 }
  0xcc   : > { %706 = vrsqrt.f32 %v235_v14  ;;  %464 = vmatmul.mubr.f32.gmra.mxu1 %v306_v2  ;;  %422 = vmatmul.mubr.f32.gmra.mxu0 %v299_v18  ;;  %v284_v20 = vmul.f32 %v263_v13, %v835_v16 }
  0xcd   : > { %v695_v21 = vpop.eup %694  ;;  %708 = vrsqrt.f32 %v243_v15  ;;  %469 = vmatprep.mubr.f32.mxu1 %v751_v3  ;;  %427 = vmatprep.mubr.f32.mxu0 %v751_v3  ;;  %v292_v9 = vmul.f32 %v271_v19, %v838_v17 }
  0xce   : > { %v697_v22 = vpop.eup %696  ;;  %v264_v25 = vmul.f32 0.0001, %v695_v21  ;;  %v300_v26 = vadd.f32 %v887_v41, %v284_v20 }
  0xcf   : > { %v272_v27 = vmul.f32 0.0001, %v697_v22  ;;  %v308_v28 = vadd.f32 %v887_v41, %v292_v9 }
  0xd0   : > { %470 = vmatmul.mubr.f32.gmra.mxu1 %v307_v8  ;;  %428 = vmatmul.mubr.f32.gmra.mxu0 %v300_v26  ;;  %v285_v29 = vmul.f32 %v264_v25, %v845_v23 }
  0xd1   : > { %v699_v16 = vpop.eup %698  ;;  %475 = vmatprep.mubr.f32.mxu1 %v751_v3  ;;  %433 = vmatprep.mubr.f32.mxu0 %v751_v3  ;;  %v293_v32 = vmul.f32 %v272_v27, %v848_v24 }
  0xd2   : > { %v701_v33 = vpop.eup %700  ;;  %v265_v17 = vmul.f32 0.0001, %v699_v16  ;;  %v301_v34 = vadd.f32 %v887_v41, %v285_v29 }
  0xd3   : > { %v273_v35 = vmul.f32 0.0001, %v701_v33  ;;  %v309_v36 = vadd.f32 %v887_v41, %v293_v32 }
  0xd4   : > { %476 = vmatmul.mubr.f32.gmra.mxu1 %v308_v28  ;;  %434 = vmatmul.mubr.f32.gmra.mxu0 %v301_v34  ;;  %v286_v39 = vmul.f32 %v265_v17, %v855_v30 }
  0xd5   : > { %v703_v40 = vpop.eup %702  ;;  %481 = vmatprep.mubr.f32.mxu1 %v751_v3  ;;  %439 = vmatprep.mubr.f32.mxu0 %v751_v3  ;;  %v294_v23 = vmul.f32 %v273_v35, %v858_v31 }
  0xd6   : > { %v705_v42 = vpop.eup %704  ;;  %v266_v24 = vmul.f32 0.0001, %v703_v40  ;;  %v302_v43 = vadd.f32 %v887_v41, %v286_v39 }
  0xd7   : > { %v274_v46 = vmul.f32 0.0001, %v705_v42  ;;  %v310_v47 = vadd.f32 %v887_v41, %v294_v23 }
  0xd8   : > { %482 = vmatmul.mubr.f32.gmra.mxu1 %v309_v36  ;;  %440 = vmatmul.mubr.f32.gmra.mxu0 %v302_v43  ;;  %v287_v48 = vmul.f32 %v266_v24, %v865_v37 }
  0xd9   : > { %v707_v49 = vpop.eup %706  ;;  %487 = vmatprep.mubr.f32.mxu1 %v751_v3  ;;  %445 = vmatprep.mubr.f32.mxu0 %v751_v3  ;;  %v295_v30 = vmul.f32 %v274_v46, %v868_v38 }
  0xda   : > { %v709_v50 = vpop.eup %708  ;;  %v267_v31 = vmul.f32 0.0001, %v707_v49  ;;  %v303_v51 = vadd.f32 %v887_v41, %v287_v48 }
  0xdb   : > { %v275_v52 = vmul.f32 0.0001, %v709_v50  ;;  %v311_v54 = vadd.f32 %v887_v41, %v295_v30 }
  0xdc   : > { %v288_v53 = vmul.f32 %v267_v31, %v875_v44  ;;  %488 = vmatmul.mubr.f32.gmra.mxu1 %v310_v47  ;;  %446 = vmatmul.mubr.f32.gmra.mxu0 %v303_v51 }
  0xdd   : > { %v296_v37 = vmul.f32 %v275_v52, %v878_v45  ;;  %493 = vmatprep.mubr.f32.mxu1 %v751_v3  ;;  %451 = vmatprep.mubr.f32.mxu0 %v751_v3 }
  0xde   : > { %v304_v38 = vadd.f32 %v887_v41, %v288_v53 }
  0xdf   : > { %v312_v55 = vadd.f32 %v887_v41, %v296_v37 }
  0xe0   : > { %494 = vmatmul.mubr.f32.gmra.mxu1 %v311_v54  ;;  %452 = vmatmul.mubr.f32.gmra.mxu0 %v304_v38 }
  0xe1   : > { %499 = vmatprep.mubr.f32.mxu1 %v751_v3 }
  0xe4   : > { %500 = vmatmul.mubr.f32.gmra.mxu1 %v312_v55 }
 0x184   : > { %v411_v44 = vpop.f32.mrf.mxu0 }
 0x185   : > { %506 = vst [vmem:[%s939_s28] sm:$0xff] %v411_v44 }
 0x186   : > { %v413_v45 = vpop.f32.mrf.mxu0 }
 0x187   : > { %507 = vst [vmem:[%s939_s28 + $0x8] sm:$0xff] %v413_v45 }
 0x188   : > { %v417_v3 = vpop.f32.mrf.mxu0  ;;  %v459_v41 = vpop.f32.mrf.mxu1 }
 0x189   : > { %508 = vst [vmem:[%s939_s28 + $0x10] sm:$0xff] %v417_v3  ;;  %522 = vst [vmem:[%s939_s28 + $0x80] sm:$0xff] %v459_v41 }
 0x18a   : > { %v419_v56 = vpop.f32.mrf.mxu0  ;;  %v461_v0 = vpop.f32.mrf.mxu1 }
 0x18b   : > { %509 = vst [vmem:[%s939_s28 + $0x18] sm:$0xff] %v419_v56  ;;  %523 = vst [vmem:[%s939_s28 + $0x88] sm:$0xff] %v461_v0 }
 0x18c   : > { %v465_v57 = vpop.f32.mrf.mxu1  ;;  %v423_v58 = vpop.f32.mrf.mxu0 }
 0x18d   : > { %524 = vst [vmem:[%s939_s28 + $0x90] sm:$0xff] %v465_v57  ;;  %510 = vst [vmem:[%s939_s28 + $0x20] sm:$0xff] %v423_v58 }
 0x18e   : > { %v467_v1 = vpop.f32.mrf.mxu1  ;;  %v425_v59 = vpop.f32.mrf.mxu0 }
 0x18f   : > { %525 = vst [vmem:[%s939_s28 + $0x98] sm:$0xff] %v467_v1  ;;  %511 = vst [vmem:[%s939_s28 + $0x28] sm:$0xff] %v425_v59 }
 0x190   : > { %v471_v60 = vpop.f32.mrf.mxu1  ;;  %v429_v61 = vpop.f32.mrf.mxu0 }
 0x191   : > { %526 = vst [vmem:[%s939_s28 + $0xa0] sm:$0xff] %v471_v60  ;;  %512 = vst [vmem:[%s939_s28 + $0x30] sm:$0xff] %v429_v61 }
 0x192   : > { %v473_v62 = vpop.f32.mrf.mxu1  ;;  %v431_v63 = vpop.f32.mrf.mxu0 }
 0x193   : > { %527 = vst [vmem:[%s939_s28 + $0xa8] sm:$0xff] %v473_v62  ;;  %513 = vst [vmem:[%s939_s28 + $0x38] sm:$0xff] %v431_v63 }
 0x194   : > { %v477_v4 = vpop.f32.mrf.mxu1  ;;  %v435_v2 = vpop.f32.mrf.mxu0 }
 0x195   : > { %528 = vst [vmem:[%s939_s28 + $0xb0] sm:$0xff] %v477_v4  ;;  %514 = vst [vmem:[%s939_s28 + $0x40] sm:$0xff] %v435_v2 }
 0x196   : > { %v479_v6 = vpop.f32.mrf.mxu1  ;;  %v437_v7 = vpop.f32.mrf.mxu0 }
 0x197   : > { %529 = vst [vmem:[%s939_s28 + $0xb8] sm:$0xff] %v479_v6  ;;  %515 = vst [vmem:[%s939_s28 + $0x48] sm:$0xff] %v437_v7 }
 0x198   : > { %v483_v10 = vpop.f32.mrf.mxu1  ;;  %v441_v5 = vpop.f32.mrf.mxu0 }
 0x199   : > { %530 = vst [vmem:[%s939_s28 + $0xc0] sm:$0xff] %v483_v10  ;;  %516 = vst [vmem:[%s939_s28 + $0x50] sm:$0xff] %v441_v5 }
 0x19a   : > { %v485_v11 = vpop.f32.mrf.mxu1  ;;  %v443_v12 = vpop.f32.mrf.mxu0 }
 0x19b   : > { %531 = vst [vmem:[%s939_s28 + $0xc8] sm:$0xff] %v485_v11  ;;  %517 = vst [vmem:[%s939_s28 + $0x58] sm:$0xff] %v443_v12 }
 0x19c   : > { %v489_v13 = vpop.f32.mrf.mxu1  ;;  %v447_v14 = vpop.f32.mrf.mxu0 }
 0x19d   : > { %532 = vst [vmem:[%s939_s28 + $0xd0] sm:$0xff] %v489_v13  ;;  %518 = vst [vmem:[%s939_s28 + $0x60] sm:$0xff] %v447_v14 }
 0x19e   : > { %v491_v15 = vpop.f32.mrf.mxu1  ;;  %v449_v18 = vpop.f32.mrf.mxu0 }
 0x19f   : > { %533 = vst [vmem:[%s939_s28 + $0xd8] sm:$0xff] %v491_v15  ;;  %519 = vst [vmem:[%s939_s28 + $0x68] sm:$0xff] %v449_v18 }
 0x1a0   : > { %v495_v19 = vpop.f32.mrf.mxu1  ;;  %v453_v8 = vpop.f32.mrf.mxu0 }
 0x1a1   : > { %534 = vst [vmem:[%s939_s28 + $0xe0] sm:$0xff] %v495_v19  ;;  %520 = vst [vmem:[%s939_s28 + $0x70] sm:$0xff] %v453_v8 }
 0x1a2   : > { %v497_v20 = vpop.f32.mrf.mxu1  ;;  %v455_v21 = vpop.f32.mrf.mxu0 }
 0x1a3   : > { %535 = vst [vmem:[%s939_s28 + $0xe8] sm:$0xff] %v497_v20  ;;  %521 = vst [vmem:[%s939_s28 + $0x78] sm:$0xff] %v455_v21 }
 0x1a4   : > { %v501_v9 = vpop.f32.mrf.mxu1 }
 0x1a5   : > { %536 = vst [vmem:[%s939_s28 + $0xf0] sm:$0xff] %v501_v9 }
 0x1a6   : > { %v503_v22 = vpop.f32.mrf.mxu1 }
 0x1a7   : > { %537 = vst [vmem:[%s939_s28 + $0xf8] sm:$0xff] %v503_v22 }
 0x1a8 PF: > { %s13_s9 = sadd.s32 1, %s746_s9  }
 0x1a9   : > { %p10_p1 = scmp.ge.s32.totalorder %s13_s9, 4  }
 0x1ab   :  { %12 = sbr.rel (!%p10_p1) target bundleno = 1 (0x1), region = 63 }
 0x1b0   :  { %562 = vsyncpa [#allocation3], 1 }
 0x1b1   :  { %564 = vsyncpa [#allocation3 + $0x1], 1 }

// kernel: custom-call.3
= control target key start
LH: loop header
LB: loop body
LE: loop exit
PB: predicated region body
PF: predicated region fallthrough
CT: control target
= control target key end

     0   :  { %s2098_s0 = inlined_call_operand.vmem [shape: f32[256,6,6], index: 0, kind: input, shape index: {}]   ;;  %s2099_s1 = inlined_call_operand.vmem [shape: f32[256,6,6], index: 1, kind: input, shape index: {}]   ;;  %s2100_s2 = inlined_call_operand.vmem [shape: f32[256,6,6], index: 2, kind: input, shape index: {}]   ;;  %s2101_s3 = inlined_call_operand.vmem [shape: f32[256,6,6], index: 3, kind: input, shape index: {}]   ;;  %s2102_s4 = inlined_call_operand.vmem [shape: f32[256,6], index: 4, kind: output, shape index: {0}]   ;;  %s2103_s5 = inlined_call_operand.vmem [shape: f32[256,6], index: 5, kind: output, shape index: {1}]   ;;  %s2104_s6 = inlined_call_operand.hbm [shape: f32[256,6,6], index: 6, kind: output, shape index: {2}]   ;;  %s2105_s7 = inlined_call_operand.hbm [shape: f32[256,6,6], index: 7, kind: output, shape index: {3}]   ;;  %s2106_s8 = inlined_call_operand.hbm [shape: f32[256,6,6], index: 8, kind: output, shape index: {4}]   ;;  %s2107_s9 = inlined_call_operand.hbm [shape: f32[256,6,6], index: 9, kind: output, shape index: {5}]  }
   0x1   :  { %2108 = sst [smem:[#allocation30_spill]] %s2098_s0 }
   0x2   :  { %11 = vsyncpa [#allocation7], 0 }
   0x3   :  { %13 = vsyncpa [#allocation7 + $0x1], 0 }
   0x4   :  { %14 = vsyncpa [#allocation9], 0 }
   0x5   :  { %16 = vsyncpa [#allocation9 + $0x1], 0 }
   0x6   :  { %17 = vsyncpa [#allocation12], 0 }
   0x7   :  { %19 = vsyncpa [#allocation12 + $0x1], 0  ;;  %s1711_s30 = smov 0   ;;  %s1713_s10 = smov 0  }
   0x8   :  { %s1715_s11 = smov 0  }
   0x9 LB: > { %s1727_s12 = sadd.s32 4294967295, %s1644_s11   ;;  %s1731_s14 = sadd.s32 1, %s1644_s11   ;;  %s1644_s11 = sphi %s1715_s11, %s2125_s11   ;;  %s1640_s10 = sphi %s1713_s10, %s2124_s10   ;;  %s1636_s30 = sphi %s1711_s30, %s2123_s30  }
   0xa   : > { %s29_s15 = sshrl.u32 %s1644_s11, 3  ;;  %s30_s16 = sshrl.u32 %s1731_s14, 3 }
   0xb   : > { %s34_s17 = sadd.s32 1, %s1640_s10  ;;  %s31_s18 = ssub.s32 %s29_s15, %s30_s16 }
   0xc   : > { %p44_p0 = scmp.ne.s32.totalorder %s1640_s10, %s1636_s30  ;;  %p32_p1 = scmp.eq.s32.totalorder %s31_s18, 0 }
   0xd   : > { %p45_p2 = scmp.eq.s32.totalorder %s1727_s12, 255  ;;  %p1400_p4 = scmp.ge.s32.totalorder %s1644_s11, 256 }
   0xe   : > { %s1740_s19 = scalar_select %p32_p1, %s1640_s10, %s34_s17  }
   0xf   : > { %p1742_p3 = por %p45_p2, %p44_p0  ;;  %95 = sbr.rel (%p1400_p4) target bundleno = 27 (0x1b), region = 16 }
  0x10   : > { %2109 = sst [smem:[#allocation29_spill]] %s1740_s19  ;;  %s97_s21 = sand.u32 (!%p1400_p4), 1, %s1644_s11  }
  0x11   : > { %s1402_s22 = sshll.u32 (!%p1400_p4), %s1644_s11, 3  ;;  %s1401_s23 = sshll.u32 (!%p1400_p4), %s97_s21, 3 }
  0x12   : > { %s2111_s0 = sld [smem:[#allocation30_spill]] (!%p1400_p4)  ;;  %s99_s27 = scalar_lea.vmem (!%p1400_p4), [#allocation0], %s1401_s23 }
  0x13   : > { %s140_s15 = scalar_lea.vmem (!%p1400_p4), %s2099_s1, %s1402_s22  ;;  %s179_s18 = scalar_lea.vmem (!%p1400_p4), %s2100_s2, %s1402_s22 }
  0x14   : > { %v169_v1 = vld [vmem:[%s140_s15] sm:$0xff]  ;;  %s138_s13 = scalar_lea.vmem [#allocation1], %s1401_s23  ;;  %s218_s24 = scalar_lea.vmem %s2101_s3, %s1402_s22 }
  0x15   : > { %170 = vst [vmem:[%s138_s13] sm:$0xff] %v169_v1  ;;  %v208_v2 = vld [vmem:[%s179_s18] sm:$0xff]  ;;  %s177_s25 = scalar_lea.vmem [#allocation2], %s1401_s23 }
  0x16   : > { %209 = vst [vmem:[%s177_s25] sm:$0xff] %v208_v2  ;;  %v247_v3 = vld [vmem:[%s218_s24] sm:$0xff] }
  0x18   : > { %s101_s26 = scalar_lea.vmem %s2111_s0, %s1402_s22 }
  0x19   : > { %v130_v0 = vld [vmem:[%s101_s26] sm:$0xff]  ;;  %s216_s26 = scalar_lea.vmem [#allocation3], %s1401_s23 }
  0x1a   : > { %131 = vst [vmem:[%s99_s27] sm:$0xff] %v130_v0  ;;  %248 = vst [vmem:[%s216_s26] sm:$0xff] %v247_v3 }
  0x1b PF: > { %p1409_p5 = scmp.ge.s32.totalorder %s1644_s11, 1  ;;  %p253_p6 = scmp.lt.s32.totalorder %s1644_s11, 257 }
  0x1d   : > { %p254_p7 = pnand %p1409_p5, %p253_p6 }
  0x1f   : > { %257 = sbr.rel (%p254_p7) target bundleno = 1072 (0x430), region = 156 }
  0x24   : > { %s1764_s13 = sand.u32 1, %s1727_s12   ;;  %s294_s27 = sand.u32 1, %s1636_s30   ;;  %v342_v4 = vlaneseq  ;;  %v1654_v11 = vmov 0.0  }
  0x25   : > { %s1410_s19 = sshll.u32 %s1764_s13, 3  ;;  %s1768_s22 = sshll.u32 %s294_s27, 3 }
  0x26   : > { %v1770_v5 = vand.u32 127, %v342_v4  ;;  %v1772_v6 = vshrl.u32 %v342_v4, 7  ;;  %s262_s23 = scalar_lea.vmem [#allocation0], %s1410_s19  ;;  %s266_s28 = scalar_lea.vmem [#allocation1], %s1410_s19 }
  0x27   : > { %v326_v7 = vld [vmem:[%s262_s23] sm:$0xff]  ;;  %v329_v8 = vld [vmem:[%s266_s28] sm:$0xff]  ;;  %s270_s29 = scalar_lea.vmem [#allocation2], %s1410_s19  ;;  %s274_s15 = scalar_lea.vmem [#allocation3], %s1410_s19 }
  0x28   : > { %v332_v9 = vld [vmem:[%s270_s29] sm:$0xff]  ;;  %v335_v10 = vld [vmem:[%s274_s15] sm:$0xff]  ;;  %s1774_s16 = scalar_lea.vmem [#allocation6], %s1410_s19  ;;  %s1777_s30 = scalar_lea.vmem [#allocation8], %s1410_s19  ;;  %v344_v5 = vmov %v1770_v5  ;;  %v347_v6 = vmov %v1772_v6  ;;  %vm1289_vm2 = vcmp.lt.s32.totalorder %v1770_v5, 6 }
  0x29   : > { %337 = vst [vmem:[%s1774_s16] sm:$0xff] %v1654_v11  ;;  %338 = vst [vmem:[%s1777_s30] sm:$0xff] %v1654_v11  ;;  %s325_s17 = smov [#allocation13]  ;;  %s328_s18 = smov [#allocation14]  ;;  %v357_v5 = vmov %v1770_v5  ;;  %v360_v6 = vmov %v1772_v6  ;;  %vm351_vm0 = vcmp.eq.s32.totalorder %v347_v6, %v344_v5 }
  0x2a   : > { %s1780_s21 = scalar_lea.vmem [#allocation10], %s1410_s19  ;;  %s1783_s24 = scalar_lea.vmem [#allocation11], %s1410_s19  ;;  %327 = vst [vmem:[%s325_s17] sm:$0xff] %v326_v7  ;;  %330 = vst [vmem:[%s328_s18] sm:$0xff] %v329_v8  ;;  %vm364_vm1 = vcmp.eq.s32.totalorder %v360_v6, %v357_v5  ;;  %v1281_v5 = vmov %v1770_v5  ;;  %v1284_v6 = vmov %v1772_v6 }
  0x2b   : > { %339 = vst [vmem:[%s1780_s21] sm:$0xff] %v1654_v11  ;;  %340 = vst [vmem:[%s1783_s24] sm:$0xff] %v1654_v11  ;;  %s331_s25 = smov [#allocation15]  ;;  %s334_s26 = smov [#allocation16]  ;;  %vm1294_vm3 = vcmp.eq.s32.totalorder %v1284_v6, %v1281_v5  ;;  %v1332_v5 = vmov %v1770_v5  ;;  %v1301_v6 = vmov %v1772_v6 }
  0x2c   : > { %333 = vst [vmem:[%s331_s25] sm:$0xff] %v332_v9  ;;  %336 = vst [vmem:[%s334_s26] sm:$0xff] %v335_v10  ;;  %s341_s16 = smov %s1774_s16  ;;  %s354_s24 = smov %s1783_s24  ;;  %v1298_v5 = vmov %v1770_v5  ;;  %v1335_v6 = vmov %v1772_v6 }
  0x2d   : > { %s1285_s23 = smov [#allocation13]  ;;  %s1302_s28 = smov [#allocation14]  ;;  %v1315_v5 = vmov %v1770_v5  ;;  %v1318_v6 = vmov %v1772_v6  ;;  %vm1345_vm4 = vcmp.eq.s32.totalorder %v1335_v6, %v1332_v5 }
  0x2e   : > { %s1319_s29 = smov [#allocation15]  ;;  %s1336_s15 = smov [#allocation16] }
  0x30   : > { %v348_v12 = vld [vmem:[%s341_s16] sm:$0x3f] }
  0x31   : > { %v352_v13 = vsel %vm351_vm0, 1.0, %v348_v12  ;;  %v1291_v16 = vld [vmem:[%s1285_s23] sm:$0x3f] }
  0x32   : > { %v361_v14 = vld [vmem:[%s354_s24] sm:$0x3f]  ;;  %353 = vst [vmem:[%s341_s16] sm:$0x3f] %v352_v13  ;;  %v1292_v18 = vsel %vm1289_vm2, %v1291_v16, 0.0 }
  0x33   : > { %v365_v15 = vsel %vm364_vm1, 1.0, %v361_v14  ;;  %v1308_v17 = vld [vmem:[%s1302_s28] sm:$0x3f]  ;;  %v1293_v22 = vmul.f32 %v1292_v18, %v1292_v18 }
  0x34   : > { %366 = vst [vmem:[%s354_s24] sm:$0x3f] %v365_v15  ;;  %v1309_v19 = vsel %vm1289_vm2, %v1308_v17, 0.0  ;;  %v1325_v20 = vld [vmem:[%s1319_s29] sm:$0x3f] }
  0x35   : > { %v1342_v21 = vld [vmem:[%s1336_s15] sm:$0x3f]  ;;  %v1310_v23 = vmul.f32 %v1309_v19, %v1309_v19  ;;  %v1326_v24 = vsel %vm1289_vm2, %v1325_v20, 0.0  ;;  %v1295_v29 = vsel %vm1294_vm3, 0.0, %v1293_v22 }
  0x36   : > { %v1343_v25 = vsel %vm1289_vm2, %v1342_v21, 0.0  ;;  %v1327_v26 = vmul.f32 %v1326_v24, %v1326_v24 }
  0x37   : > { %v1312_v27 = vadd.f32 %v1310_v23, %v1293_v22  ;;  %v1344_v28 = vmul.f32 %v1343_v25, %v1343_v25  ;;  %v1311_v30 = vadd.f32 %v1310_v23, %v1295_v29 }
  0x39   : > { %v1329_v31 = vadd.f32 %v1327_v26, %v1312_v27  ;;  %v1328_v32 = vadd.f32 %v1327_v26, %v1311_v30  ;;  %v1346_v33 = vsel %vm1345_vm4, 0.0, %v1344_v28 }
  0x3b   : > { %v1348_v34 = vadd.f32 %v1344_v28, %v1329_v31  ;;  %v1347_v35 = vadd.f32 %v1346_v33, %v1328_v32 }
  0x3d   : > { %1349 = vadd.xlane.f32.xlu0 %v1348_v34 }
  0x41   : > { %1357 = vadd.xlane.f32.xlu0 %v1347_v35 }
  0xc6   : > { %v1350_v36 = vpop.xlane.xlu0 %1349 }
  0xc7   : > { %v1351_v37 = vrot.slane %v1350_v36, 4 }
  0xc9   : > { %v1352_v38 = vadd.f32 %v1351_v37, %v1350_v36 }
  0xca   : > { %v1358_v39 = vpop.xlane.xlu0 %1357 }
  0xcb   : > { %v1353_v40 = vrot.slane %v1352_v38, 2  ;;  %v1359_v41 = vrot.slane %v1358_v39, 4 }
  0xcd   : > { %v1360_v42 = vadd.f32 %v1359_v41, %v1358_v39  ;;  %v1354_v43 = vadd.f32 %v1353_v40, %v1352_v38 }
  0xcf   : > { %v1361_v44 = vrot.slane %v1360_v42, 2  ;;  %v1355_v46 = vrot.slane %v1354_v43, 1 }
  0xd1   : > { %v1362_v45 = vadd.f32 %v1361_v44, %v1360_v42  ;;  %v1356_v49 = vadd.f32 %v1355_v46, %v1354_v43 }
  0xd3   : > { %v1363_v47 = vrot.slane %v1362_v45, 1 }
  0xd5   : > { %v1364_v48 = vadd.f32 %v1363_v47, %v1362_v45 }
  0xd7   : > { %1450 = vpush %v1364_v48 }
  0xd8   : > { %1452 = vpush %v1356_v49 }
 0x108   : > { %s1451_s17 = spop %1450 }
 0x109   : > { %s1453_s18 = spop %1452 }
 0x10a   : > { %s1367_s25 = smul.f32 1e-10, %s1453_s18 }
 0x10c   : > { %p1368_p8 = scmp.le.f32.partialorder %s1451_s17, %s1367_s25 }
 0x10d   : > { %s1812_s26 = smov (!%p1368_p8), 0  }
 0x10e   : > { %1371 = sbr.rel (%p1368_p8) target bundleno = 952 (0x3b8), region = 373 }
 0x113 LB: >> { %s1817_s23 = smov 0   ;;  %s1648_s26 = sphi %s1812_s26, %s2112_s26  }
 0x114 LB: >>> { %s471_s28 = smov [#allocation13]  ;;  %v475_v5 = vmov %v1770_v5  ;;  %v478_v6 = vmov %v1772_v6  ;;  %s491_s29 = smov [#allocation14]  ;;  %vm794_vm14 = vcmp.eq.s32.totalorder %v1772_v6, 0  ;;  %vm806_vm15 = vcmp.eq.s32.totalorder %v1772_v6, 5  ;;  %s1652_s23 = sphi %s1817_s23, %s470_s23  }
 0x115   : >>> { %v495_v5 = vmov %v1770_v5  ;;  %v498_v6 = vmov %v1772_v6  ;;  %v479_v50 = vld [vmem:[%s471_s28] sm:$0x3f]  ;;  %vm482_vm5 = vcmp.eq.s32.totalorder %v478_v6, %v475_v5  ;;  %s511_s15 = smov [#allocation16]  ;;  %s472_s17 = smov [#allocation17] }
 0x116   : >>> { %vm502_vm6 = vcmp.eq.s32.totalorder %v498_v6, %v495_v5  ;;  %v515_v5 = vmov %v1770_v5  ;;  %v518_v6 = vmov %v1772_v6  ;;  %v483_v51 = vsel %vm482_vm5, %v479_v50, 0.0  ;;  %v499_v52 = vld [vmem:[%s491_s29] sm:$0x3f]  ;;  %s492_s18 = smov [#allocation18]  ;;  %s512_s25 = smov [#allocation19] }
 0x117   : >>> { %vm522_vm7 = vcmp.eq.s32.totalorder %v518_v6, %v515_v5  ;;  %v484_v53 = vrot.slane %v483_v51, 4  ;;  %v503_v54 = vsel %vm502_vm6, %v499_v52, 0.0  ;;  %v519_v55 = vld [vmem:[%s511_s15] sm:$0x3f]  ;;  %s535_s28 = smov [#allocation18]  ;;  %s533_s29 = smov [#allocation17]  ;;  %v584_v5 = vmov %v1770_v5 }
 0x118   : >>> { %v504_v56 = vrot.slane %v503_v54, 4  ;;  %v523_v57 = vsel %vm522_vm7, %v519_v55, 0.0  ;;  %s537_s15 = smov [#allocation19]  ;;  %v587_v6 = vmov %v1772_v6  ;;  %v599_v5 = vmov %v1770_v5  ;;  %s1834_s19 = smov [#allocation14] }
 0x119   : >>> { %v485_v58 = vadd.f32 %v484_v53, %v483_v51  ;;  %v524_v59 = vrot.slane %v523_v57, 4  ;;  %v602_v6 = vmov %v1772_v6  ;;  %vm589_vm12 = vcmp.eq.s32.totalorder %v587_v6, %v584_v5  ;;  %s1838_s27 = smov [#allocation16]  ;;  %s1841_s16 = smov %s1774_s16  ;;  %v619_v50 = vld [vmem:[%s1834_s19] sm:$0x3f] }
 0x11a   : >>> { %v505_v60 = vadd.f32 %v504_v56, %v503_v54  ;;  %vm604_vm13 = vcmp.eq.s32.totalorder %v602_v6, %v599_v5  ;;  %s1844_s30 = smov %s1777_s30  ;;  %s1847_s21 = smov %s1780_s21  ;;  %v621_v52 = vld [vmem:[%s1838_s27] sm:$0x3f]  ;;  %v697_v5 = vmov %v1770_v5  ;;  %v700_v6 = vmov %v1772_v6 }
 0x11b   : >>> { %v486_v61 = vrot.slane %v485_v58, 2  ;;  %v525_v62 = vadd.f32 %v524_v59, %v523_v57  ;;  %s1852_s24 = smov %s1783_s24  ;;  %v842_v53 = vld [vmem:[%s1841_s16] sm:$0x3f]  ;;  %s836_s0 = smov [#allocation25]  ;;  %v711_v5 = vmov %v1770_v5  ;;  %v714_v6 = vmov %v1772_v6 }
 0x11c   : >>> { %v506_v63 = vrot.slane %v505_v60, 2  ;;  %v843_v54 = vld [vmem:[%s1844_s30] sm:$0x3f]  ;;  %vm704_vm0 = vcmp.eq.s32.totalorder %v700_v6, %v697_v5  ;;  %v670_v5 = vmov %v1770_v5  ;;  %v673_v6 = vmov %v1772_v6  ;;  %s470_s23 = sadd.s32 1, %s1652_s23  }
 0x11d   : >>> { %v487_v0 = vadd.f32 %v486_v61, %v485_v58  ;;  %v526_v1 = vrot.slane %v525_v62, 2  ;;  %v844_v55 = vld [vmem:[%s1847_s21] sm:$0x3f]  ;;  %v684_v5 = vmov %v1770_v5  ;;  %v687_v6 = vmov %v1772_v6  ;;  %p467_p9 = scmp.ge.s32.totalorder %s470_s23, 11  }
 0x11e   : >>> { %v507_v2 = vadd.f32 %v506_v63, %v505_v60  ;;  %v845_v57 = vld [vmem:[%s1852_s24] sm:$0x3f]  ;;  %vm719_vm1 = vcmp.eq.s32.totalorder %v714_v6, %v711_v5  ;;  %vm678_vm3 = vcmp.eq.s32.totalorder %v673_v6, %v670_v5  ;;  %vm691_vm4 = vcmp.eq.s32.totalorder %v687_v6, %v684_v5 }
 0x11f   : >>> { %v488_v3 = vrot.slane %v487_v0, 1  ;;  %v527_v4 = vadd.f32 %v526_v1, %v525_v62  ;;  %vm733_vm5 = vcmp.eq.s32.totalorder %v1770_v5, 0  ;;  %vm737_vm6 = vcmp.eq.s32.totalorder %v1770_v5, 1 }
 0x120   : >>> { %v508_v7 = vrot.slane %v507_v2, 1  ;;  %vm750_vm7 = vcmp.eq.s32.totalorder %v1770_v5, 5  ;;  %v371_v5 = vmov (%p467_p9), %v1770_v5  ;;  %v374_v6 = vmov (%p467_p9), %v1772_v6 }
 0x121   : >>> { %v489_v8 = vadd.f32 %v488_v3, %v487_v0  ;;  %v528_v9 = vrot.slane %v527_v4, 1  ;;  %v424_v5 = vmov (%p467_p9), %v1770_v5 }
 0x122   : >>> { %v509_v10 = vadd.f32 %v508_v7, %v507_v2 }
 0x123   : >>> { %490 = vst [vmem:[%s472_s17] sm:$0x1] %v489_v8  ;;  %v529_v11 = vadd.f32 %v528_v9, %v527_v4  ;;  %s572_s17 = smov [#allocation20] }
 0x124   : >>> { %510 = vst [vmem:[%s492_s18] sm:$0x1] %v509_v10  ;;  %s574_s18 = smov [#allocation21] }
 0x125   : >>> { %530 = vst [vmem:[%s512_s25] sm:$0x1] %v529_v11  ;;  %s531_s25 = smov [#allocation22] }
 0x126   : >>> { %s576_s25 = smov %s531_s25 }
 0x12a   : >>> { %v534_v14 = vld [vmem:[%s533_s29] sm:$0xff]  ;;  %s580_s29 = smov [#allocation22] }
 0x12b   : >>> { %v536_v12 = vld [vmem:[%s535_s28] sm:$0xff]  ;;  %v557_v29 = vand.u32 2147483647, %v534_v14  ;;  %s532_s28 = smov [#allocation23] }
 0x12c   : >>> { %v540_v13 = vmul.f32 2.0, %v536_v12  ;;  %v538_v15 = vld [vmem:[%s537_s15] sm:$0xff]  ;;  %v558_v32 = vand.u32 2147483647, %v536_v12  ;;  %s578_s28 = smov %s532_s28  ;;  %s595_s15 = smov [#allocation23] }
 0x12d   : >>> { %v539_v16 = vsub.f32 %v538_v15, %v534_v14  ;;  %v559_v30 = vand.u32 2147483647, %v538_v15 }
 0x12e   : >>> { %1506 = vrcp.f32 %v540_v13 }
 0x12f   : >>> { %v560_v31 = vmin.f32 %v557_v29, %v559_v30 }
 0x131   : >>> { %v561_v33 = vmul.f32 1.1920929e-08, %v560_v31 }
 0x133   : >>> { %vm562_vm11 = vcmp.le.f32.partialorder %v558_v32, %v561_v33 }
 0x13b   : >>> { %v1507_v17 = vpop.eup %1506 }
 0x13c   : >>> { %v542_v18 = vmul.f32 %v1507_v17, %v539_v16 }
 0x13e   : >>> { %v544_v19 = vmul.f32 %v542_v18, %v542_v18  ;;  %vm543_vm10 = vcmp.ge.f32.partialorder %v542_v18, 0.0 }
 0x140   : >>> { %v545_v20 = vadd.f32 1.0, %v544_v19 }
 0x142   : >>> { %1508 = vrsqrt.f32 %v545_v20  ;;  %vm548_vm8 = vcmp.eq.f32.partialorder %v545_v20, inf  ;;  %v551_v22 = vand.u32 2147483648, %v545_v20  ;;  %vm550_vm9 = vcmp.eq.f32.partialorder %v545_v20, 0.0 }
 0x14f   : >>> { %v1509_v21 = vpop.eup %1508 }
 0x150   : >>> { %v547_v23 = vmul.f32 %v1509_v21, %v545_v20 }
 0x152   : >>> { %v549_v24 = vsel %vm548_vm8, %v545_v20, %v547_v23  ;;  %vm386_vm8 = vcmp.eq.s32.totalorder (%p467_p9), %v374_v6, %v371_v5  ;;  %v427_v6 = vmov (%p467_p9), %v1772_v6  ;;  %v390_v5 = vmov (%p467_p9), %v1770_v5 }
 0x153   : >>> { %v552_v25 = vsel %vm550_vm9, %v551_v22, %v549_v24  ;;  %v393_v6 = vmov (%p467_p9), %v1772_v6  ;;  %v407_v5 = vmov (%p467_p9), %v1770_v5  ;;  %vm439_vm9 = vcmp.eq.s32.totalorder (%p467_p9), %v427_v6, %v424_v5 }
 0x154   : >>> { %v553_v26 = vxor.u32 2147483648, %v552_v25  ;;  %v410_v6 = vmov (%p467_p9), %v1772_v6 }
 0x156   : >>> { %v554_v27 = vsel %vm543_vm10, %v552_v25, %v553_v26 }
 0x157   : >>> { %v555_v28 = vadd.f32 %v554_v27, %v542_v18 }
 0x159   : >>> { %1510 = vrcp.f32 %v555_v28 }
 0x166   : >>> { %v1511_v34 = vpop.eup %1510 }
 0x167   : >>> { %v563_v35 = vsel %vm562_vm11, 0.0, %v1511_v34 }
 0x168   : >>> { %v564_v36 = vmul.f32 %v563_v35, %v563_v35  ;;  %v568_v37 = vmul.f32 %v563_v35, %v536_v12 }
 0x16a   : >>> { %v565_v38 = vadd.f32 1.0, %v564_v36  ;;  %v569_v39 = vsub.f32 %v534_v14, %v568_v37  ;;  %v571_v40 = vadd.f32 %v568_v37, %v538_v15 }
 0x16c   : >>> { %1512 = vrsqrt.f32 %v565_v38  ;;  %573 = vst [vmem:[%s572_s17] sm:$0xff] %v569_v39  ;;  %575 = vst [vmem:[%s574_s18] sm:$0xff] %v571_v40  ;;  %s593_s17 = smov [#allocation24]  ;;  %s610_s18 = smov [#allocation24] }
 0x179   : >>> { %v1513_v41 = vpop.eup %1512 }
 0x17a   : >>> { %577 = vst [vmem:[%s576_s25] sm:$0xff] %v1513_v41  ;;  %v567_v42 = vmul.f32 %v1513_v41, %v563_v35  ;;  %s1832_s25 = smov [#allocation13] }
 0x17b   : >>> { %v618_v49 = vld [vmem:[%s1832_s25] sm:$0x3f] }
 0x17c   : >>> { %579 = vst [vmem:[%s578_s28] sm:$0xff] %v567_v42  ;;  %s608_s28 = smov [#allocation25] }
 0x181   : >>> { %v581_v43 = vld [vmem:[%s580_s29] ss:$0 sm:$0xff]  ;;  %s1836_s29 = smov [#allocation15] }
 0x182   : >>> { %v590_v44 = vsel %vm589_vm12, %v581_v43, 0.0  ;;  %v620_v51 = vld [vmem:[%s1836_s29] sm:$0x3f] }
 0x183   : >>> { %591 = vadd.xlane.f32.xlu0 %v590_v44  ;;  %v596_v45 = vld [vmem:[%s595_s15] ss:$0 sm:$0xff]  ;;  %s834_s15 = smov [#allocation24] }
 0x184   : >>> { %v605_v46 = vsel %vm604_vm13, %v596_v45, 0.0 }
 0x187   : >>> { %606 = vadd.xlane.f32.xlu0 %v605_v46 }
 0x20c   : >>> { %v592_v47 = vpop.xlane.xlu0 %591 }
 0x20d   : >>> { %594 = vst [vmem:[%s593_s17] sm:$0xff] %v592_v47  ;;  %s612_s17 = smov [#allocation25] }
 0x210   : >>> { %v607_v48 = vpop.xlane.xlu0 %606 }
 0x211   : >>> { %609 = vst [vmem:[%s608_s28] sm:$0xff] %v607_v48  ;;  %s1868_s28 = smov [#allocation15] }
 0x214   : >>> { %v611_v56 = vld [vmem:[%s610_s18] sm:$0xff]  ;;  %s640_s18 = smov [#allocation23] }
 0x215   : >>> { %v835_v58 = vld [vmem:[%s834_s15] sm:$0xff]  ;;  %v622_v59 = vmul.f32 %v618_v49, %v611_v56  ;;  %v625_v60 = vmul.f32 %v619_v50, %v611_v56  ;;  %v629_v61 = vmul.f32 %v620_v51, %v611_v56  ;;  %v632_v62 = vmul.f32 %v621_v52, %v611_v56  ;;  %s1870_s15 = smov [#allocation16] }
 0x216   : >>> { %v846_v63 = vmul.f32 %v842_v53, %v835_v58  ;;  %v849_v0 = vmul.f32 %v843_v54, %v835_v58  ;;  %v853_v1 = vmul.f32 %v844_v55, %v835_v58  ;;  %v856_v2 = vmul.f32 %v845_v57, %v835_v58  ;;  %v641_v24 = vld [vmem:[%s640_s18] ss:$0 sm:$0xff]  ;;  %s666_s18 = smov [#allocation13] }
 0x218   : >>> { %v613_v3 = vld [vmem:[%s612_s17] sm:$0xff]  ;;  %s1872_s17 = smov [#allocation13] }
 0x219   : >>> { %v837_v4 = vld [vmem:[%s836_s0] sm:$0xff]  ;;  %v623_v7 = vmul.f32 %v620_v51, %v613_v3  ;;  %v626_v8 = vmul.f32 %v621_v52, %v613_v3  ;;  %v628_v9 = vmul.f32 %v618_v49, %v613_v3  ;;  %v631_v10 = vmul.f32 %v619_v50, %v613_v3  ;;  %s638_s0 = smov [#allocation22] }
 0x21a   : >>> { %v847_v11 = vmul.f32 %v844_v55, %v837_v4  ;;  %v850_v12 = vmul.f32 %v845_v57, %v837_v4  ;;  %v852_v13 = vmul.f32 %v842_v53, %v837_v4  ;;  %v855_v14 = vmul.f32 %v843_v54, %v837_v4  ;;  %v639_v23 = vld [vmem:[%s638_s0] ss:$0 sm:$0xff]  ;;  %s667_s0 = smov [#allocation20] }
 0x21b   : >>> { %v624_v15 = vsub.f32 %v622_v59, %v623_v7  ;;  %v627_v16 = vsub.f32 %v625_v60, %v626_v8  ;;  %v630_v17 = vadd.f32 %v629_v61, %v628_v9  ;;  %v633_v18 = vadd.f32 %v632_v62, %v631_v10  ;;  %v674_v59 = vld [vmem:[%s667_s0] ss:$0 sm:$0xff]  ;;  %s786_s0 = smov [#allocation13] }
 0x21c   : >>> { %v848_v19 = vsub.f32 %v846_v63, %v847_v11  ;;  %v851_v20 = vsub.f32 %v849_v0, %v850_v12  ;;  %v854_v21 = vadd.f32 %v853_v1, %v852_v13  ;;  %v857_v22 = vadd.f32 %v856_v2, %v855_v14 }
 0x21d   : >>> { %635 = vst [vmem:[%s1834_s19] sm:$0x3f] %v627_v16  ;;  %637 = vst [vmem:[%s1838_s27] sm:$0x3f] %v633_v18  ;;  %s1885_s27 = smov [#allocation14]  ;;  %s708_s19 = smov [#allocation21] }
 0x21e   : >>> { %634 = vst [vmem:[%s1832_s25] sm:$0x3f] %v624_v15  ;;  %636 = vst [vmem:[%s1836_s29] sm:$0x3f] %v630_v17  ;;  %s694_s25 = smov [#allocation15]  ;;  %s707_s29 = smov [#allocation16]  ;;  %v715_v55 = vld [vmem:[%s708_s19] ss:$0 sm:$0xff] }
 0x21f   : >>> { %858 = vst [vmem:[%s1841_s16] sm:$0x3f] %v848_v19  ;;  %859 = vst [vmem:[%s1844_s30] sm:$0x3f] %v851_v20  ;;  %s1875_s16 = smov %s1774_s16  ;;  %s1883_s30 = smov %s1777_s30 }
 0x220   : >>> { %860 = vst [vmem:[%s1847_s21] sm:$0x3f] %v854_v21  ;;  %861 = vst [vmem:[%s1852_s24] sm:$0x3f] %v857_v22  ;;  %s1878_s21 = smov %s1780_s21  ;;  %s1888_s24 = smov %s1783_s24 }
 0x221   : >>> { %s723_s19 = smov [#allocation14] }
 0x224   : >>> { %v649_v26 = vld [vmem:[%s1870_s15] sm:$0x3f] }
 0x225   : >>> { %v648_v25 = vld [vmem:[%s1868_s28] sm:$0x3f]  ;;  %v657_v32 = vmul.f32 %v649_v26, %v641_v24  ;;  %v660_v38 = vmul.f32 %v649_v26, %v639_v23 }
 0x226   : >>> { %v646_v27 = vld [vmem:[%s1872_s17] sm:$0x3f]  ;;  %v656_v31 = vmul.f32 %v648_v25, %v639_v23  ;;  %v659_v33 = vmul.f32 %v648_v25, %v641_v24 }
 0x227   : >>> { %v864_v28 = vld [vmem:[%s1875_s16] ss:$0 sm:$0xff]  ;;  %v1429_v30 = vld [vmem:[%s1875_s16 + $0x5] ss:$0 sm:$0xff]  ;;  %v650_v44 = vmul.f32 %v646_v27, %v639_v23  ;;  %v653_v45 = vmul.f32 %v646_v27, %v641_v24 }
 0x228   : >>> { %v1428_v29 = vld [vmem:[%s1875_s16 - $0x1] sm:$0x3e]  ;;  %v1433_v41 = vld [vmem:[%s1883_s30 + $0x5] ss:$0 sm:$0xff]  ;;  %v658_v43 = vsub.f32 %v656_v31, %v657_v32  ;;  %v661_v49 = vadd.f32 %v660_v38, %v659_v33 }
 0x229   : >>> { %v871_v34 = vsel %vm794_vm14, %v864_v28, %v1428_v29  ;;  %v875_v35 = vld [vmem:[%s1878_s21] ss:$0 sm:$0xff]  ;;  %v1431_v36 = vld [vmem:[%s1878_s21 + $0x1] sm:$0x1f] }
 0x22a   : >>> { %v888_v37 = vld [vmem:[%s1883_s30] ss:$0 sm:$0xff]  ;;  %874 = vst [vmem:[%s1875_s16] sm:$0x3f] %v871_v34  ;;  %v883_v39 = vsel %vm806_vm15, %v1429_v30, %v1431_v36  ;;  %v1435_v47 = vld [vmem:[%s1888_s24 + $0x1] sm:$0x1f]  ;;  %664 = vst [vmem:[%s1868_s28] sm:$0x3f] %v658_v43 }
 0x22b   : >>> { %v1432_v40 = vld [vmem:[%s1883_s30 - $0x1] sm:$0x3e]  ;;  %1430 = vst [vmem:[%s1875_s16 + $0x1] sm:$0x1] %v875_v35  ;;  %885 = vst [vmem:[%s1878_s21] sm:$0x3f] %v883_v39  ;;  %v907_v50 = vsel %vm806_vm15, %v1433_v41, %v1435_v47  ;;  %s681_s28 = smov [#allocation14] }
 0x22c   : >>> { %v899_v42 = vld [vmem:[%s1888_s24] ss:$0 sm:$0xff]  ;;  %v895_v46 = vsel %vm794_vm14, %v888_v37, %v1432_v40  ;;  %665 = vst [vmem:[%s1870_s15] sm:$0x3f] %v661_v49  ;;  %s1930_s15 = smov [#allocation15] }
 0x22d   : >>> { %v647_v48 = vld [vmem:[%s1885_s27] sm:$0x3f]  ;;  %898 = vst [vmem:[%s1883_s30] sm:$0x3f] %v895_v46  ;;  %909 = vst [vmem:[%s1888_s24] sm:$0x3f] %v907_v50 }
 0x22e   : >>> { %v651_v51 = vmul.f32 %v647_v48, %v641_v24  ;;  %v654_v52 = vmul.f32 %v647_v48, %v639_v23  ;;  %1434 = vst [vmem:[%s1883_s30 + $0x1] sm:$0x1] %v899_v42 }
 0x230   : >>> { %v652_v53 = vsub.f32 %v650_v44, %v651_v51  ;;  %v655_v54 = vadd.f32 %v654_v52, %v653_v45 }
 0x231   : >>> { %v701_v56 = vld [vmem:[%s694_s25] sm:$0x3f] }
 0x232   : >>> { %662 = vst [vmem:[%s1872_s17] sm:$0x3f] %v652_v53  ;;  %663 = vst [vmem:[%s1885_s27] sm:$0x3f] %v655_v54  ;;  %v705_v57 = vsel %vm704_vm0, 0.0, %v701_v56  ;;  %s1655_s17 = smov 1   ;;  %s722_s27 = smov [#allocation13] }
 0x233   : >>> { %v716_v58 = vld [vmem:[%s707_s29] sm:$0x3f]  ;;  %706 = vst [vmem:[%s694_s25] sm:$0x3f] %v705_v57  ;;  %s1656_s25 = smov 127  }
 0x234   : >>> { %v720_v60 = vsel %vm719_vm1, %v715_v55, %v716_v58 }
 0x235   : >>> { %721 = vst [vmem:[%s707_s29] sm:$0x3f] %v720_v60  ;;  %s1933_s29 = smov [#allocation16] }
 0x239   : >>> { %v675_v61 = vld [vmem:[%s666_s18] sm:$0x3f] }
 0x23a   : >>> { %v688_v62 = vld [vmem:[%s681_s28] sm:$0x3f]  ;;  %v679_v63 = vsel %vm678_vm3, %v674_v59, %v675_v61 }
 0x23b   : >>> { %v692_v0 = vsel %vm691_vm4, 0.0, %v688_v62  ;;  %680 = vst [vmem:[%s666_s18] sm:$0x3f] %v679_v63  ;;  %v760_v1 = vld [vmem:[%s1930_s15] sm:$0x3f]  ;;  %s810_s18 = smov [#allocation14] }
 0x23c   : >>> { %693 = vst [vmem:[%s681_s28] sm:$0x3f] %v692_v0  ;;  %761 = vrot.lane.b32.xlu0 %v760_v1, %s1655_s17  ;;  %v756_v7 = vld [vmem:[%s1933_s29] sm:$0x3f]  ;;  %s787_s28 = smov [#allocation15] }
 0x23d   : >>> { %v777_v8 = vld [vmem:[%s1933_s29] sm:$0x3f] }
 0x23e   : >>> { %v759_v26 = vld [vmem:[%s1930_s15] sm:$0x3f] }
 0x242   : >>> { %v728_v2 = vld [vmem:[%s722_s27] sm:$0x3f] }
 0x243   : >>> { %729 = vrot.lane.b32.xlu1 %v728_v2, %s1655_s17  ;;  %v724_v3 = vld [vmem:[%s723_s19] sm:$0x3f] }
 0x244   : >>> { %v745_v4 = vld [vmem:[%s723_s19] sm:$0x3f] }
 0x245   : >>> { %v727_v14 = vld [vmem:[%s722_s27] sm:$0x3f] }
 0x247   : >>> { %725 = vrot.lane.b32.xlu1 %v724_v3, %s1655_s17 }
 0x24b   : >>> { %746 = vrot.lane.b32.xlu1 %v745_v4, %s1656_s25 }
 0x24f   : >>> { %757 = vrot.lane.b32.xlu1 %v756_v7, %s1655_s17  ;;  %s811_s17 = smov [#allocation16] }
 0x253   : >>> { %778 = vrot.lane.b32.xlu1 %v777_v8, %s1656_s25  ;;  %s411_s25 = smov (%p467_p9), [#allocation15] }
 0x2ae   : >>> { %v762_v16 = vpop.permute.xlu0 %761 }
 0x2af   : >>> { %v766_v18 = vsel %vm733_vm5, %v760_v1, %v762_v16 }
 0x2b5   : >>> { %v730_v9 = vpop.permute.xlu1 %729 }
 0x2b6   : >>> { %v734_v10 = vsel %vm733_vm5, %v728_v2, %v730_v9 }
 0x2b9   : >>> { %v726_v11 = vpop.permute.xlu1 %725 }
 0x2ba   : >>> { %v738_v12 = vsel %vm737_vm6, %v726_v11, %v734_v10 }
 0x2bb   : >>> { %v744_v13 = vsel %vm1289_vm2, %v738_v12, 0.0 }
 0x2bc   : >>> { %752 = vst [vmem:[%s722_s27] sm:$0x3f] %v744_v13  ;;  %s375_s27 = smov (%p467_p9), [#allocation13] }
 0x2bd   : >>> { %v747_v15 = vpop.permute.xlu1 %746 }
 0x2be   : >>> { %v751_v17 = vsel %vm750_vm7, %v727_v14, %v747_v15 }
 0x2bf   : >>> { %753 = vst [vmem:[%s723_s19] sm:$0x3f] %v751_v17  ;;  %s394_s19 = smov (%p467_p9), [#allocation14] }
 0x2c1   : >>> { %v758_v19 = vpop.permute.xlu1 %757 }
 0x2c2   : >>> { %v770_v20 = vsel %vm737_vm6, %v758_v19, %v766_v18 }
 0x2c3   : >>> { %v788_v21 = vld [vmem:[%s786_s0] ss:$0 sm:$0xff]  ;;  %v1421_v23 = vld [vmem:[%s786_s0 + $0x5] ss:$0 sm:$0xff]  ;;  %v776_v25 = vsel %vm1289_vm2, %v770_v20, 0.0 }
 0x2c4   : >>> { %v1420_v22 = vld [vmem:[%s786_s0 - $0x1] sm:$0x3e]  ;;  %784 = vst [vmem:[%s1930_s15] sm:$0x3f] %v776_v25  ;;  %s910_s15 = sadd.s32 (%p467_p9), 1, %s1648_s26  }
 0x2c5   : >>> { %v795_v24 = vsel %vm794_vm14, %v788_v21, %v1420_v22  ;;  %v779_v27 = vpop.permute.xlu1 %778  ;;  %p463_p10 = scmp.ge.s32.totalorder (%p467_p9), %s910_s15, 15  ;;  %s2112_s26 = smov (%p467_p9), %s910_s15 }
 0x2c6   : >>> { %798 = vst [vmem:[%s786_s0] sm:$0x3f] %v795_v24  ;;  %v812_v28 = vld [vmem:[%s810_s18] ss:$0 sm:$0xff]  ;;  %v1425_v30 = vld [vmem:[%s810_s18 + $0x5] ss:$0 sm:$0xff]  ;;  %v783_v31 = vsel %vm750_vm7, %v759_v26, %v779_v27 }
 0x2c7   : >>> { %v1424_v29 = vld [vmem:[%s810_s18 - $0x1] sm:$0x3e]  ;;  %785 = vst [vmem:[%s1933_s29] sm:$0x3f] %v783_v31  ;;  %s428_s29 = smov (%p467_p9), [#allocation16] }
 0x2c8   : >>> { %v819_v32 = vsel %vm794_vm14, %v812_v28, %v1424_v29 }
 0x2c9   : >>> { %822 = vst [vmem:[%s810_s18] sm:$0x3f] %v819_v32 }
 0x2cb   : >>> { %v799_v33 = vld [vmem:[%s787_s28] ss:$0 sm:$0xff]  ;;  %v1423_v34 = vld [vmem:[%s787_s28 + $0x1] sm:$0x1f] }
 0x2cc   : >>> { %1422 = vst [vmem:[%s786_s0 + $0x1] sm:$0x1] %v799_v33  ;;  %v807_v35 = vsel %vm806_vm15, %v1421_v23, %v1423_v34 }
 0x2cd   : >>> { %809 = vst [vmem:[%s787_s28] sm:$0x3f] %v807_v35 }
 0x2ce   : >>> { %v823_v36 = vld [vmem:[%s811_s17] ss:$0 sm:$0xff]  ;;  %v1427_v37 = vld [vmem:[%s811_s17 + $0x1] sm:$0x1f] }
 0x2cf   : >>> { %1426 = vst [vmem:[%s810_s18 + $0x1] sm:$0x1] %v823_v36  ;;  %v831_v38 = vsel %vm806_vm15, %v1425_v30, %v1427_v37 }
 0x2d0   : >>> { %833 = vst [vmem:[%s811_s17] sm:$0x3f] %v831_v38  ;;  %469 = sbr.rel (!%p467_p9) target bundleno = 276 (0x114), region = 368 }
 0x2d3   : >> { %v381_v39 = vld [vmem:[%s375_s27] sm:$0x3f] (%p467_p9) }
 0x2d4   : >> { %v382_v41 = vsel (%p467_p9), %vm1289_vm2, %v381_v39, 0.0  ;;  %v417_v43 = vld [vmem:[%s411_s25] sm:$0x3f] (%p467_p9) }
 0x2d5   : >> { %v383_v45 = vmul.f32 %v382_v41, %v382_v41  ;;  %v418_v47 = vsel %vm1289_vm2, %v417_v43, 0.0 }
 0x2d6   : >> { %v400_v40 = vld [vmem:[%s394_s19] sm:$0x3f]  ;;  %v419_v49 = vmul.f32 %v418_v47, %v418_v47 }
 0x2d7   : >> { %v401_v42 = vsel %vm1289_vm2, %v400_v40, 0.0  ;;  %v434_v44 = vld [vmem:[%s428_s29] sm:$0x3f]  ;;  %v387_v52 = vsel %vm386_vm8, 0.0, %v383_v45 }
 0x2d8   : >> { %v402_v46 = vmul.f32 %v401_v42, %v401_v42  ;;  %v435_v48 = vsel %vm1289_vm2, %v434_v44, 0.0 }
 0x2d9   : >> { %v436_v51 = vmul.f32 %v435_v48, %v435_v48 }
 0x2da   : >> { %v404_v50 = vadd.f32 %v402_v46, %v383_v45  ;;  %v403_v53 = vadd.f32 %v402_v46, %v387_v52 }
 0x2db   : >> { %v440_v56 = vsel %vm439_vm9, 0.0, %v436_v51 }
 0x2dc   : >> { %v421_v54 = vadd.f32 %v419_v49, %v404_v50  ;;  %v420_v55 = vadd.f32 %v419_v49, %v403_v53 }
 0x2de   : >> { %v442_v57 = vadd.f32 %v436_v51, %v421_v54  ;;  %v441_v58 = vadd.f32 %v440_v56, %v420_v55 }
 0x2e0   : >> { %443 = vadd.xlane.f32.xlu0 %v442_v57 }
 0x2e4   : >> { %451 = vadd.xlane.f32.xlu0 %v441_v58 }
 0x369   : >> { %v444_v59 = vpop.xlane.xlu0 %443 }
 0x36a   : >> { %v445_v60 = vrot.slane %v444_v59, 4 }
 0x36c   : >> { %v446_v61 = vadd.f32 %v445_v60, %v444_v59 }
 0x36d   : >> { %v452_v62 = vpop.xlane.xlu0 %451 }
 0x36e   : >> { %v447_v63 = vrot.slane %v446_v61, 2  ;;  %v453_v0 = vrot.slane %v452_v62, 4 }
 0x370   : >> { %v454_v1 = vadd.f32 %v453_v0, %v452_v62  ;;  %v448_v2 = vadd.f32 %v447_v63, %v446_v61 }
 0x372   : >> { %v455_v3 = vrot.slane %v454_v1, 2  ;;  %v449_v7 = vrot.slane %v448_v2, 1 }
 0x374   : >> { %v456_v4 = vadd.f32 %v455_v3, %v454_v1  ;;  %v450_v10 = vadd.f32 %v449_v7, %v448_v2 }
 0x376   : >> { %v457_v8 = vrot.slane %v456_v4, 1 }
 0x378   : >> { %v458_v9 = vadd.f32 %v457_v8, %v456_v4 }
 0x37a   : >> { %1454 = vpush %v458_v9 }
 0x37b   : >> { %1456 = vpush %v450_v10 }
 0x3ab   : >> { %s1455_s23 = spop %1454 }
 0x3ac   : >> { %s1457_s0 = spop %1456 }
 0x3ad   : >> { %s461_s18 = smul.f32 1e-10, %s1457_s0 }
 0x3af   : >> { %p462_p11 = scmp.le.f32.partialorder %s1455_s23, %s461_s18 }
 0x3b1   : >> { %p464_p12 = por %p463_p10, %p462_p11 }
 0x3b3   : > { %912 = sbr.rel (!%p464_p12) target bundleno = 275 (0x113), region = 379 }
 0x3b8 PF: > { %s917_s28 = smov [#allocation13]  ;;  %v921_v5 = vmov %v1770_v5  ;;  %v924_v6 = vmov %v1772_v6  ;;  %s937_s26 = smov [#allocation16] }
 0x3b9   : > { %v941_v5 = vmov %v1770_v5  ;;  %v944_v6 = vmov %v1772_v6  ;;  %v925_v11 = vld [vmem:[%s917_s28] sm:$0x3f]  ;;  %vm928_vm10 = vcmp.eq.s32.totalorder %v924_v6, %v921_v5  ;;  %s913_s17 = sand.u32 7, %s1727_s12   ;;  %s2113_s15 = scalar_lea.vmem [#allocation4], %s1768_s22 }
 0x3ba   : > { %vm948_vm11 = vcmp.eq.s32.totalorder %v944_v6, %v941_v5  ;;  %v929_v12 = vsel %vm928_vm10, %v925_v11, 0.0  ;;  %v945_v14 = vld [vmem:[%s937_s26] sm:$0x3f]  ;;  %s914_s27 = scalar_lea.vmem %s2113_s15, %s913_s17 [#allocation4]  ;;  %s2114_s19 = scalar_lea.vmem [#allocation5], %s1768_s22 }
 0x3bb   : > { %v930_v13 = vrot.slane %v929_v12, 4  ;;  %v949_v15 = vsel %vm948_vm11, %v945_v14, 0.0  ;;  %s916_s25 = scalar_lea.vmem %s2114_s19, %s913_s17 [#allocation5]  ;;  %s918_s27 = smov %s914_s27 }
 0x3bc   : > { %v950_v17 = vrot.slane %v949_v15, 4  ;;  %s938_s25 = smov %s916_s25  ;;  %s988_s18 = sshrl.u32 (%p1742_p3), %s1727_s12, 3 }
 0x3bd   : > { %v931_v16 = vadd.f32 %v930_v13, %v929_v12  ;;  %s2115_s28 = scalar_lea.vmem (%p1742_p3), [#allocation4], %s1768_s22  ;;  %s1442_s26 = sshll.u32 (%p1742_p3), %s988_s18, 3 }
 0x3be   : > { %v951_v19 = vadd.f32 %v950_v17, %v949_v15  ;;  %s990_s19 = scalar_lea.vmem (%p1742_p3), %s2102_s4, %s1442_s26 }
 0x3bf   : > { %v932_v18 = vrot.slane %v931_v16, 2 }
 0x3c0   : > { %v952_v21 = vrot.slane %v951_v19, 2 }
 0x3c1   : > { %v933_v20 = vadd.f32 %v932_v18, %v931_v16 }
 0x3c2   : > { %v953_v6 = vadd.f32 %v952_v21, %v951_v19 }
 0x3c3   : > { %v934_v5 = vrot.slane %v933_v20, 1 }
 0x3c4   : > { %v954_v23 = vrot.slane %v953_v6, 1  ;;  %987 = sbr.rel (!%p1742_p3) target bundleno = 976 (0x3d0), region = 174 }
 0x3c5   : > { %v935_v22 = vadd.f32 %v934_v5, %v933_v20 }
 0x3c6   : > { %v955_v24 = vadd.f32 %v954_v23, %v953_v6 }
 0x3c7   : > { %936 = vst [vmem:[%s918_s27] sm:$0x1] %v935_v22 }
 0x3c8   : > { %956 = vst [vmem:[%s938_s25] sm:$0x1] %v955_v24 }
 0x3ce   : > { %v1019_v25 = vld [vmem:[%s2115_s28] sm:$0xff] }
 0x3cf   : > { %1020 = vst [vmem:[%s990_s19] sm:$0xff] %v1019_v25 }
 0x3d0 PF: > { %1026 = sbr.rel (!%p1742_p3) target bundleno = 984 (0x3d8), region = 212  ;;  %s1027_s27 = sshrl.u32 (%p1742_p3), %s1727_s12, 3 }
 0x3d1   : > { %s2116_s25 = scalar_lea.vmem (%p1742_p3), [#allocation5], %s1768_s22  ;;  %s1443_s0 = sshll.u32 (%p1742_p3), %s1027_s27, 3 }
 0x3d2   : > { %s1029_s28 = scalar_lea.vmem (%p1742_p3), %s2103_s5, %s1443_s0 }
 0x3d6   : > { %v1058_v26 = vld [vmem:[%s2116_s25] sm:$0xff] }
 0x3d7   : > { %1059 = vst [vmem:[%s1029_s28] sm:$0xff] %v1058_v26 }
 0x3d8 PF: > { %s2019_s18 = sshll.u32 %s1727_s12, 7  ;;  %s1079_s26 = sshll.u32 %s1777_s30, 4  ;;  %s1080_s26 = int_to_ptr.vmem [resolvable:$true] %s1079_s26 }
 0x3d9   : > { %s1077_s15 = scalar_lea.hbm %s2105_s7, %s2019_s18  ;;  %s1514_s22 = scalar_lea.vmem %s1080_s26, 128 }
 0x3da   : > { %p1515_p13 = scmp.ne.s32.totalorder %s1080_s26, %s1514_s22  ;;  %s1657_s19 = smov [#allocation8]  }
 0x3db   : > { %s1516_s27 = sshll.u32 %s1657_s19, 4  ;;  %s1517_s27 = int_to_ptr.vmem [resolvable:$false] %s1516_s27 }
 0x3dc   : > { %s1518_s29 = scalar_lea.vmem %s1517_s27, 256  ;;  %p1519_p0 = scmp.lt.s32.totalorder %s1080_s26, %s1517_s27 }
 0x3dd   : > { %p1520_p1 = scmp.lt.s32.totalorder %s1518_s29, %s1514_s22 }
 0x3df   : > { %p1521_p2 = por %p1520_p1, %p1519_p0 }
 0x3e1   : > { %p1522_p3 = pnand %p1521_p2, %p1515_p13 }
 0x3e3   : > { %1525 = shalt.err (!%p1522_p3)
}
 0x3e4   : > { %s1526_s12 = scalar_lea.hbm %s1077_s15, 128  ;;  %s1528_s0 = scalar_lea.hbm %s2105_s7, 32768 }
 0x3e5   : > { %p1527_p4 = scmp.ne.s32.totalorder %s1077_s15, %s1526_s12  ;;  %p1529_p5 = scmp.lt.s32.totalorder %s1077_s15, %s2105_s7 }
 0x3e6   : > { %p1530_p6 = scmp.lt.s32.totalorder %s1528_s0, %s1526_s12 }
 0x3e8   : > { %p1531_p7 = por %p1530_p6, %p1529_p5 }
 0x3ea   : > { %p1532_p8 = pnand %p1531_p7, %p1527_p4 }
 0x3ec   : > { %1535 = shalt.err (!%p1532_p8)
}
 0x3ed   : > { %s2117_s20 = scalar_lea.sflag [#allocation9], %s1764_s13  ;;  %s1067_s19 = scalar_lea.hbm %s2104_s6, %s2019_s18 }
 0x3ee   : > { %1082 = dma.vmem_to_hbm [thread:$0]  %s1080_s26, 128, %s1077_s15, %s2117_s20  }
 0x3ef   : > { %s1069_s27 = sshll.u32 %s1774_s16, 4  ;;  %s2043_s30 = scalar_lea.hbm %s2106_s8, %s2019_s18  ;;  %s1070_s27 = int_to_ptr.vmem [resolvable:$true] %s1069_s27 }
 0x3f0   : > { %s1536_s12 = scalar_lea.vmem %s1070_s27, 128  ;;  %s1658_s0 = smov [#allocation6]  }
 0x3f1   : > { %p1537_p9 = scmp.ne.s32.totalorder %s1070_s27, %s1536_s12  ;;  %s1538_s25 = sshll.u32 %s1658_s0, 4  ;;  %s1539_s25 = int_to_ptr.vmem [resolvable:$false] %s1538_s25 }
 0x3f2   : > { %s1540_s28 = scalar_lea.vmem %s1539_s25, 256  ;;  %p1541_p10 = scmp.lt.s32.totalorder %s1070_s27, %s1539_s25 }
 0x3f3   : > { %p1542_p11 = scmp.lt.s32.totalorder %s1540_s28, %s1536_s12 }
 0x3f5   : > { %p1543_p12 = por %p1542_p11, %p1541_p10 }
 0x3f7   : > { %p1544_p13 = pnand %p1543_p12, %p1537_p9 }
 0x3f9   : > { %1547 = shalt.err (!%p1544_p13)
}
 0x3fa   : > { %s1548_s26 = scalar_lea.hbm %s1067_s19, 128  ;;  %s1550_s20 = scalar_lea.hbm %s2104_s6, 32768 }
 0x3fb   : > { %p1549_p0 = scmp.ne.s32.totalorder %s1067_s19, %s1548_s26  ;;  %p1551_p1 = scmp.lt.s32.totalorder %s1067_s19, %s2104_s6 }
 0x3fc   : > { %p1552_p2 = scmp.lt.s32.totalorder %s1550_s20, %s1548_s26 }
 0x3fe   : > { %p1553_p3 = por %p1552_p2, %p1551_p1 }
 0x400   : > { %p1554_p4 = pnand %p1553_p3, %p1549_p0 }
 0x402   : > { %1557 = shalt.err (!%p1554_p4)
}
 0x403   : > { %s2118_s29 = scalar_lea.sflag [#allocation7], %s1764_s13  ;;  %s1089_s23 = sshll.u32 %s1780_s21, 4  ;;  %s1090_s23 = int_to_ptr.vmem [resolvable:$true] %s1089_s23 }
 0x404   : > { %1072 = dma.vmem_to_hbm [thread:$0]  %s1070_s27, 128, %s1067_s19, %s2118_s29  }
 0x405   : > { %s2058_s25 = scalar_lea.hbm %s2107_s9, %s2019_s18  ;;  %s1099_s28 = sshll.u32 %s1783_s24, 4  ;;  %s1100_s28 = int_to_ptr.vmem [resolvable:$true] %s1099_s28 }
 0x406   : > { %s1558_s16 = scalar_lea.vmem %s1090_s23, 128  ;;  %s1659_s26 = smov [#allocation10]  }
 0x407   : > { %p1559_p5 = scmp.ne.s32.totalorder %s1090_s23, %s1558_s16  ;;  %s1560_s15 = sshll.u32 %s1659_s26, 4  ;;  %s1561_s15 = int_to_ptr.vmem [resolvable:$false] %s1560_s15 }
 0x408   : > { %s1562_s20 = scalar_lea.vmem %s1561_s15, 256  ;;  %p1563_p6 = scmp.lt.s32.totalorder %s1090_s23, %s1561_s15 }
 0x409   : > { %p1564_p7 = scmp.lt.s32.totalorder %s1562_s20, %s1558_s16 }
 0x40b   : > { %p1565_p8 = por %p1564_p7, %p1563_p6 }
 0x40d   : > { %p1566_p9 = pnand %p1565_p8, %p1559_p5 }
 0x40f   : > { %1569 = shalt.err (!%p1566_p9)
}
 0x410   : > { %s1570_s21 = scalar_lea.hbm %s2043_s30, 128  ;;  %s1572_s24 = scalar_lea.hbm %s2106_s8, 32768 }
 0x411   : > { %p1571_p10 = scmp.ne.s32.totalorder %s2043_s30, %s1570_s21  ;;  %p1573_p11 = scmp.lt.s32.totalorder %s2043_s30, %s2106_s8 }
 0x412   : > { %p1574_p12 = scmp.lt.s32.totalorder %s1572_s24, %s1570_s21 }
 0x414   : > { %p1575_p13 = por %p1574_p12, %p1573_p11 }
 0x416   : > { %p1576_p0 = pnand %p1575_p13, %p1571_p10 }
 0x418   : > { %1579 = shalt.err (!%p1576_p0)
}
 0x419   : > { %s2119_s22 = scalar_lea.sflag [#allocation9], %s1764_s13  ;;  %s1580_s29 = scalar_lea.vmem %s1100_s28, 128 }
 0x41a   : > { %1092 = dma.vmem_to_hbm [thread:$0]  %s1090_s23, 128, %s2043_s30, %s2119_s22  }
 0x41b   : > { %p1581_p1 = scmp.ne.s32.totalorder %s1100_s28, %s1580_s29  ;;  %s1660_s12 = smov [#allocation11]  }
 0x41c   : > { %s1582_s0 = sshll.u32 %s1660_s12, 4  ;;  %s1583_s0 = int_to_ptr.vmem [resolvable:$false] %s1582_s0 }
 0x41d   : > { %s1584_s16 = scalar_lea.vmem %s1583_s0, 256  ;;  %p1585_p2 = scmp.lt.s32.totalorder %s1100_s28, %s1583_s0 }
 0x41e   : > { %p1586_p3 = scmp.lt.s32.totalorder %s1584_s16, %s1580_s29 }
 0x420   : > { %p1587_p4 = por %p1586_p3, %p1585_p2 }
 0x422   : > { %p1588_p5 = pnand %p1587_p4, %p1581_p1 }
 0x424   : > { %1591 = shalt.err (!%p1588_p5)
}
 0x425   : > { %s1592_s26 = scalar_lea.hbm %s2058_s25, 128  ;;  %s1594_s30 = scalar_lea.hbm %s2107_s9, 32768 }
 0x426   : > { %p1593_p6 = scmp.ne.s32.totalorder %s2058_s25, %s1592_s26  ;;  %p1595_p7 = scmp.lt.s32.totalorder %s2058_s25, %s2107_s9 }
 0x427   : > { %p1596_p8 = scmp.lt.s32.totalorder %s1594_s30, %s1592_s26 }
 0x429   : > { %p1597_p9 = por %p1596_p8, %p1595_p7 }
 0x42b   : > { %p1598_p10 = pnand %p1597_p9, %p1593_p6 }
 0x42d   : > { %1601 = shalt.err (!%p1598_p10)
}
 0x42e   : > { %s2120_s18 = scalar_lea.sflag [#allocation12], %s1764_s13 }
 0x42f   : > { %1102 = dma.vmem_to_hbm [thread:$0]  %s1100_s28, 128, %s2058_s25, %s2120_s18  }
 0x430 PF: > { %p1462_p11 = scmp.ge.s32.totalorder %s1644_s11, 2  ;;  %s2121_s19 = sadd.s32 4294967294, %s1644_s11  }
 0x431   : > { %s1122_s24 = sand.u32 1, %s2121_s19  }
 0x432   : > { %s1123_s27 = scalar_lea.sflag [#allocation7], %s1122_s24 }
 0x433   : > { %1623 = dma.done.wait (%p1462_p11), %s1123_s27, 128  }
 0x434   : > { %1625 = vsyncadd (%p1462_p11), %s1123_s27, 4294967168  ;;  %s1129_s17 = scalar_lea.sflag [#allocation9], %s1122_s24 }
 0x435   : > { %1627 = dma.done.wait (%p1462_p11), %s1129_s17, 256  }
 0x436   : > { %1629 = vsyncadd (%p1462_p11), %s1129_s17, 4294967040  ;;  %s1141_s22 = scalar_lea.sflag [#allocation12], %s1122_s24 }
 0x437   : > { %1631 = dma.done.wait (%p1462_p11), %s1141_s22, 128  }
 0x438   : > { %1633 = vsyncadd (%p1462_p11), %s1141_s22, 4294967168  ;;  %s2122_s13 = sld [smem:[#allocation29_spill]]  ;;  %p22_p12 = scmp.ge.s32.totalorder %s1731_s14, 258  }
 0x439   : > { %s2123_s30 = smov %s1640_s10  ;;  %s2125_s11 = smov %s1731_s14 }
 0x43a   :  { %24 = sbr.rel (!%p22_p12) target bundleno = 9 (0x9), region = 390 }
 0x43e   : > { %s2124_s10 = smov %s2122_s13 }
 0x43f   :  { %1146 = vsyncpa [#allocation7], 1 }
 0x440   :  { %1148 = vsyncpa [#allocation7 + $0x1], 1 }
 0x441   :  { %1149 = vsyncpa [#allocation9], 1 }
 0x442   :  { %1151 = vsyncpa [#allocation9 + $0x1], 1 }
 0x443   :  { %1152 = vsyncpa [#allocation12], 1 }
 0x444   :  { %1154 = vsyncpa [#allocation12 + $0x1], 1 }

</bundles_post_ra>
